<compile_context>
chip_gen: v7x
topology: tpu7x:2x2x1
jax: 0.10.0
libtpu: 0.0.40
codegen_flags: <defaults>
</compile_context>

<pallas_src>
import functools

import jax
import jax.numpy as jnp
from jax.experimental import pallas as pl
from jax.experimental.pallas import tpu as pltpu

EPS = 1e-5
NEG_SLOPE = 0.01  # torch.nn.LeakyReLU default


# ----------------------------- kernel helpers -------------------------------

def _moments(h):
    """Per-channel mean / biased variance over all rows.

    Single fused MXU push: ones(1, r) @ concat([h, h*h]) -> (1, 2C)."""
    r, c = h.shape
    ones = jnp.ones((1, r), jnp.float32)
    s = jnp.dot(ones, jnp.concatenate([h, h * h], axis=-1),
                preferred_element_type=jnp.float32)           # (1, 2C)
    rinv = jnp.float32(1.0 / r)
    mu = s[:, :c] * rinv
    var = jnp.maximum(s[:, c:] * rinv - mu * mu, 0.0)
    return mu, var


def _inorm(h):
    mu, var = _moments(h)
    return (h - mu) * jax.lax.rsqrt(var + EPS)


def _inorm_lrelu(h):
    hn = _inorm(h)
    # LeakyReLU: max(x, slope*x) is exact for 0 < slope < 1.
    return jnp.maximum(hn, NEG_SLOPE * hn)


def _edge_conv(x, onehot, w1_ref, w2_ref, w3_ref, *, n, k):
    """One EdgeConv stage, fully in VMEM.  x: (n, Cin) f32 -> (n, Cout) f32.

    The channel concat cat([y - x, x]) is removed algebraically:
        e @ W1 = y @ W1[:Cin] + x @ (W1[Cin:] - W1[:Cin]),
    and since y = gather(x), the neighbor path is gather(x @ W1[:Cin]).
    Both projections come from one fused matmul against the host-side
    concatenated (Cin, 2*Cout) weight."""
    xb = x.astype(jnp.bfloat16)
    tc = jnp.dot(xb, w1_ref[...], preferred_element_type=jnp.float32)   # (n, 2*Cout)
    cout = tc.shape[1] // 2
    t = tc[:, :cout]                                                    # neighbor path
    c = tc[:, cout:]                                                    # center path
    # bf16 x bf16 gather on the MXU (exact: onehot entries are 0/1).
    g = jnp.dot(onehot, t.astype(jnp.bfloat16),
                preferred_element_type=jnp.float32)                     # (k*n, Cout)
    h = (g.reshape(k, n, cout) + c[None, :, :]).reshape(k * n, cout)
    h = _inorm_lrelu(h)
    h = _inorm_lrelu(jnp.dot(h.astype(jnp.bfloat16), w2_ref[...],
                             preferred_element_type=jnp.float32))
    h = _inorm_lrelu(jnp.dot(h.astype(jnp.bfloat16), w3_ref[...],
                             preferred_element_type=jnp.float32))
    # max-pool over the k neighbors (rows are neighbor-major, point-minor)
    return jnp.max(h.reshape(k, n, cout), axis=0)


def featnet_branch_kernel(x_ref, idx_ref,
                          e1w1, e1w2, e1w3,
                          e2w1, e2w2, e2w3,
                          e3w1, e3w2, e3w3,
                          wa, wb, bias, o_ref, *, n, k, bt):
    # x_ref: (bt, n, D)   idx_ref: (bt, k*n, 1) int32 (k-major)   o_ref: (bt, n, 64)
    cols = jax.lax.broadcasted_iota(jnp.int32, (k * n, n), 1)     # built once
    for bi in range(bt):                                          # statically unrolled
        x0 = x_ref[bi].astype(jnp.float32)                        # (n, D)
        idx = idx_ref[bi]                                         # (k*n, 1)
        # bf16 one-hot gather matrix, built once per batch, reused by all 3 stages
        onehot = jnp.where(idx == cols, 1.0, 0.0).astype(jnp.bfloat16)

        x1 = _edge_conv(x0, onehot, e1w1, e1w2, e1w3, n=n, k=k)   # (n, 32)
        x2 = _edge_conv(x1, onehot, e2w1, e2w2, e2w3, n=n, k=k)   # (n, 32)
        x3 = _edge_conv(x2, onehot, e3w1, e3w2, e3w3, n=n, k=k)   # (n, 64)

        # conv4: Conv1d(no bias) -> InstanceNorm1d -> Conv1d(+bias)
        h = jnp.dot(x3.astype(jnp.bfloat16), wa[...],
                    preferred_element_type=jnp.float32)
        h = _inorm(h)
        out = jnp.dot(h.astype(jnp.bfloat16), wb[...],
                      preferred_element_type=jnp.float32) + bias[...]
        o_ref[bi] = out.astype(o_ref.dtype)


# ----------------------------- JAX glue -------------------------------------

def knn_indices(kpts, k):
    """knn_graph(..., include_self=True)[0]: indices of k nearest (self first)."""
    xx = jnp.sum(kpts ** 2, axis=2)                               # (B, N)
    dist = xx[:, :, None] + xx[:, None, :] - 2.0 * jnp.einsum(
        'bnd,bmd->bnm', kpts, kpts)
    n = kpts.shape[1]
    eye = jnp.eye(n, dtype=bool)[None]
    # clamp fp-cancellation negatives so self (diag == 0) is always included
    dist = jnp.where(eye, 0.0, jnp.maximum(dist, 0.0))
    _, ind = jax.lax.top_k(-dist, k)                              # (B, N, k)
    return ind


def _vmem_limit_bytes():
    """Generation-aware scoped-VMEM limit: ~80% of physical (102 MiB on
    v5e/v6e, ~51 MiB on v7x); conservative 48 MiB fallback."""
    try:
        info = pltpu.get_tpu_info()
        cap = getattr(info, "vmem_capacity_bytes", None)
        if cap:
            return int(cap * 0.8)
    except Exception:
        pass
    return 48 * 1024 * 1024


def _cost_estimate(B, N, k, kpts, idx, weights):
    layer_io = [(3, 32), (32, 32), (32, 64)]
    flops, trans = 0, 0
    for cin, cout in layer_io:
        flops += 2 * N * cin * (2 * cout)              # fused neighbor/center projection
        flops += 2 * (k * N) * N * cout                # bf16 one-hot gather matmul
        flops += 2 * 2 * (k * N) * cout * cout         # conv2 / conv3
        flops += 3 * (2 * (k * N) * (2 * cout))        # fused moment matmuls (3 norms)
        trans += 3 * cout                              # rsqrt per channel per norm
    flops += 2 * 2 * N * 64 * 64 + 2 * N * 128         # conv4 matmuls + moments
    trans += 64
    flops *= B
    trans *= B
    bytes_acc = (kpts.size * kpts.dtype.itemsize + idx.size * 4
                 + sum(int(w.size) * w.dtype.itemsize for w in weights)
                 + B * N * 64 * 4)
    return int(flops), int(bytes_acc), int(trans)


def featnet_branch(kpts, ind, weights, *, batch_tile=None):
    """Fused ec1 -> ec2 -> ec3 -> conv4 for one branch.  kpts: (B, N, D) f32."""
    B, N, D = kpts.shape
    k = ind.shape[2]
    # Keep N a multiple of 8 so the (k*n, C) <-> (k, n, C) reshapes stay views;
    # correctness does not depend on it (only layout copies).
    if batch_tile is None:
        # Amortize per-grid-step overhead at small N, but keep >= 2 parallel
        # grid entries so both v7x TensorCores get work.
        batch_tile = 2 if (B % 2 == 0 and B >= 4) else 1
    assert B % batch_tile == 0, "B must be divisible by batch_tile"

    # k-major flat indices: row j*N + i holds ind[b, i, j]  (per-batch gather)
    idx_km = jnp.transpose(ind, (0, 2, 1)).reshape(B, k * N, 1).astype(jnp.int32)

    kern = functools.partial(featnet_branch_kernel, n=N, k=k, bt=batch_tile)
    in_specs = ([pl.BlockSpec((batch_tile, N, D), lambda b: (b, 0, 0)),
                 pl.BlockSpec((batch_tile, k * N, 1), lambda b: (b, 0, 0))]
                + [pl.BlockSpec(w.shape, lambda b: (0, 0)) for w in weights])
    flops, bytes_acc, trans = _cost_estimate(B, N, k, kpts, idx_km, weights)

    return pl.pallas_call(
        kern,
        out_shape=jax.ShapeDtypeStruct((B, N, 64), jnp.float32),
        grid=(B // batch_tile,),
        in_specs=in_specs,
        out_specs=pl.BlockSpec((batch_tile, N, 64), lambda b: (b, 0, 0)),
        compiler_params=pltpu.CompilerParams(
            dimension_semantics=("parallel",),
            vmem_limit_bytes=_vmem_limit_bytes()),
        cost_estimate=pl.CostEstimate(
            flops=flops, transcendentals=trans, bytes_accessed=bytes_acc),
    )(kpts, idx_km, *weights)


# ----------------------------- parameters -----------------------------------

def _w(key, cin, cout):
    return (jax.random.uniform(key, (cin, cout), minval=-1.0, maxval=1.0)
            / jnp.sqrt(jnp.float32(cin))).astype(jnp.float32)


def init_params(key):
    ks = jax.random.split(key, 12)
    return {
        # EdgeConv(3, 32): Conv2d(6,32,1), Conv2d(32,32,1), Conv2d(32,32,1)
        'ec1': (_w(ks[0], 6, 32), _w(ks[1], 32, 32), _w(ks[2], 32, 32)),
        # EdgeConv(32, 32): Conv2d(64,32,1), Conv2d(32,32,1), Conv2d(32,32,1)
        'ec2': (_w(ks[3], 64, 32), _w(ks[4], 32, 32), _w(ks[5], 32, 32)),
        # EdgeConv(32, 64): Conv2d(64,64,1), Conv2d(64,64,1), Conv2d(64,64,1)
        'ec3': (_w(ks[6], 64, 64), _w(ks[7], 64, 64), _w(ks[8], 64, 64)),
        # conv4: Conv1d(64,64,1,bias=False), InstanceNorm1d, Conv1d(64,64,1)
        'c4': (_w(ks[9], 64, 64), _w(ks[10], 64, 64),
               (jax.random.uniform(ks[11], (1, 64), minval=-1.0, maxval=1.0)
                / 8.0).astype(jnp.float32)),
    }


def prepare_branch_weights(params):
    """Split W1 for the concat-free formulation, fuse neighbor/center weights
    into one (Cin, 2*Cout) matrix, cast matmul weights to bf16."""
    def ec(w1, w2, w3, cin):
        wn = w1[:cin]                    # neighbor path      (applied to gather(x))
        wc = w1[cin:] - w1[:cin]         # center path        (applied to x)
        w1cat = jnp.concatenate([wn, wc], axis=1).astype(jnp.bfloat16)  # (cin, 2*cout)
        return [w1cat, w2.astype(jnp.bfloat16), w3.astype(jnp.bfloat16)]
    w = []
    w += ec(*params['ec1'], cin=3)
    w += ec(*params['ec2'], cin=32)
    w += ec(*params['ec3'], cin=32)
    wa, wb, bias = params['c4']
    w += [wa.astype(jnp.bfloat16), wb.astype(jnp.bfloat16), bias.astype(jnp.float32)]
    return tuple(w)


# ----------------------------- FeatNet forward -------------------------------

def featnet_forward(params, kpts_fixed, kpts_moving, k):
    weights = prepare_branch_weights(params)
    fixed_ind = knn_indices(kpts_fixed, k)
    moving_ind = knn_indices(kpts_moving, k * 4)
    x = featnet_branch(kpts_fixed, fixed_ind, weights)
    y = featnet_branch(kpts_moving, moving_ind, weights)
    return x, y


if __name__ == "__main__":
    key = jax.random.PRNGKey(0)
    kf, km = jax.random.split(key)
    B, N, D = 2, 16, 3
    K = 2  # moving branch uses k*4 = 8 neighbors
    kpts_fixed = jax.random.uniform(kf, (B, N, D), dtype=jnp.float32)
    kpts_moving = jax.random.uniform(km, (B, N, D), dtype=jnp.float32)

    params = init_params(jax.random.PRNGKey(1))
    x, y = featnet_forward(params, kpts_fixed, kpts_moving, K)
    jax.block_until_ready((x, y))

    assert x.shape == (B, N, 64) and y.shape == (B, N, 64)
    assert bool(jnp.all(jnp.isfinite(x))) and bool(jnp.all(jnp.isfinite(y)))
    print("KERNEL_OK")
</pallas_src>

<mosaic_0001>
module attributes {stable_mosaic.version = 11 : i64} {
  func.func @featnet_branch_kernel(%arg0: i32, %arg1: memref<1x16x3xf32, #tpu.memory_space<vmem>>, %arg2: memref<1x32x1xi32, #tpu.memory_space<vmem>>, %arg3: memref<3x64xbf16, #tpu.memory_space<vmem>>, %arg4: memref<32x32xbf16, #tpu.memory_space<vmem>>, %arg5: memref<32x32xbf16, #tpu.memory_space<vmem>>, %arg6: memref<32x64xbf16, #tpu.memory_space<vmem>>, %arg7: memref<32x32xbf16, #tpu.memory_space<vmem>>, %arg8: memref<32x32xbf16, #tpu.memory_space<vmem>>, %arg9: memref<32x128xbf16, #tpu.memory_space<vmem>>, %arg10: memref<64x64xbf16, #tpu.memory_space<vmem>>, %arg11: memref<64x64xbf16, #tpu.memory_space<vmem>>, %arg12: memref<64x64xbf16, #tpu.memory_space<vmem>>, %arg13: memref<64x64xbf16, #tpu.memory_space<vmem>>, %arg14: memref<1x64xf32, #tpu.memory_space<vmem>>, %arg15: memref<1x16x64xf32, #tpu.memory_space<vmem>>) attributes {dimension_semantics = [#tpu.dimension_semantics<parallel>], iteration_bounds = array<i64: 2>, scalar_prefetch = 0 : i64, scratch_operands = 0 : i64, tpu.core_type = #tpu.core_type<tc>, window_params = [{transform_indices = @transform_0, window_bounds = array<i64: 1, 16, 3>}, {transform_indices = @transform_1, window_bounds = array<i64: 1, 32, 1>}, {pipeline_mode = #tpu.pipeline_mode<synchronous>, transform_indices = @transform_2, window_bounds = array<i64: 3, 64>}, {pipeline_mode = #tpu.pipeline_mode<synchronous>, transform_indices = @transform_3, window_bounds = array<i64: 32, 32>}, {pipeline_mode = #tpu.pipeline_mode<synchronous>, transform_indices = @transform_4, window_bounds = array<i64: 32, 32>}, {pipeline_mode = #tpu.pipeline_mode<synchronous>, transform_indices = @transform_5, window_bounds = array<i64: 32, 64>}, {pipeline_mode = #tpu.pipeline_mode<synchronous>, transform_indices = @transform_6, window_bounds = array<i64: 32, 32>}, {pipeline_mode = #tpu.pipeline_mode<synchronous>, transform_indices = @transform_7, window_bounds = array<i64: 32, 32>}, {pipeline_mode = #tpu.pipeline_mode<synchronous>, transform_indices = @transform_8, window_bounds = array<i64: 32, 128>}, {pipeline_mode = #tpu.pipeline_mode<synchronous>, transform_indices = @transform_9, window_bounds = array<i64: 64, 64>}, {pipeline_mode = #tpu.pipeline_mode<synchronous>, transform_indices = @transform_10, window_bounds = array<i64: 64, 64>}, {pipeline_mode = #tpu.pipeline_mode<synchronous>, transform_indices = @transform_11, window_bounds = array<i64: 64, 64>}, {pipeline_mode = #tpu.pipeline_mode<synchronous>, transform_indices = @transform_12, window_bounds = array<i64: 64, 64>}, {pipeline_mode = #tpu.pipeline_mode<synchronous>, transform_indices = @transform_13, window_bounds = array<i64: 1, 64>}, {transform_indices = @transform_14, window_bounds = array<i64: 1, 16, 64>}]} {
    %0 = tpu.iota {dimensions = array<i32: 1>} : vector<32x16xi32>
    %c0 = arith.constant 0 : index
    %c0_0 = arith.constant 0 : index
    %c0_1 = arith.constant 0 : index
    %1 = vector.load %arg1[%c0, %c0_0, %c0_1] : memref<1x16x3xf32, #tpu.memory_space<vmem>>, vector<1x16x3xf32>
    %2 = vector.shape_cast %1 : vector<1x16x3xf32> to vector<16x3xf32>
    %c0_2 = arith.constant 0 : index
    %c0_3 = arith.constant 0 : index
    %c0_4 = arith.constant 0 : index
    %3 = vector.load %arg2[%c0_2, %c0_3, %c0_4] : memref<1x32x1xi32, #tpu.memory_space<vmem>>, vector<1x32x1xi32>
    %4 = vector.shape_cast %3 : vector<1x32x1xi32> to vector<32x1xi32>
    %5 = vector.broadcast %4 : vector<32x1xi32> to vector<32x16xi32>
    %6 = arith.cmpi eq, %5, %0 : vector<32x16xi32>
    %cst = arith.constant 1.000000e+00 : f32
    %cst_5 = arith.constant 0.000000e+00 : f32
    %7 = vector.broadcast %cst : f32 to vector<32x16xf32>
    %8 = vector.broadcast %cst_5 : f32 to vector<32x16xf32>
    %9 = arith.select %6, %7, %8 : vector<32x16xi1>, vector<32x16xf32>
    %10 = arith.truncf %9 : vector<32x16xf32> to vector<32x16xbf16>
    %11 = arith.truncf %2 : vector<16x3xf32> to vector<16x3xbf16>
    %c0_6 = arith.constant 0 : index
    %c0_7 = arith.constant 0 : index
    %12 = vector.load %arg3[%c0_6, %c0_7] : memref<3x64xbf16, #tpu.memory_space<vmem>>, vector<3x64xbf16>
    %cst_8 = arith.constant dense<0.000000e+00> : vector<16x64xf32>
    %13 = tpu.matmul %11, %12, %cst_8 {dimension_numbers = #tpu.dot_dimension_numbers<[1], [0], [0], [1], [0, 0, 1, 1], [], []>} : vector<16x3xbf16>, vector<3x64xbf16>, vector<16x64xf32> -> vector<16x64xf32>
    %14 = vector.extract_strided_slice %13 {offsets = [0, 0], sizes = [16, 32], strides = [1, 1]} : vector<16x64xf32> to vector<16x32xf32>
    %15 = vector.extract_strided_slice %13 {offsets = [0, 32], sizes = [16, 32], strides = [1, 1]} : vector<16x64xf32> to vector<16x32xf32>
    %16 = arith.truncf %14 : vector<16x32xf32> to vector<16x32xbf16>
    %cst_9 = arith.constant dense<0.000000e+00> : vector<32x32xf32>
    %17 = tpu.matmul %10, %16, %cst_9 {dimension_numbers = #tpu.dot_dimension_numbers<[1], [0], [0], [1], [0, 0, 1, 1], [], []>} : vector<32x16xbf16>, vector<16x32xbf16>, vector<32x32xf32> -> vector<32x32xf32>
    %18 = vector.shape_cast %17 : vector<32x32xf32> to vector<2x16x32xf32>
    %19 = vector.shape_cast %15 : vector<16x32xf32> to vector<1x16x32xf32>
    %20 = vector.broadcast %19 : vector<1x16x32xf32> to vector<2x16x32xf32>
    %21 = arith.addf %18, %20 : vector<2x16x32xf32>
    %22 = vector.shape_cast %21 : vector<2x16x32xf32> to vector<32x32xf32>
    %cst_10 = arith.constant 1.000000e+00 : f32
    %23 = vector.broadcast %cst_10 : f32 to vector<1x32xf32>
    %24 = arith.mulf %22, %22 : vector<32x32xf32>
    %25 = tpu.concatenate %22, %24 in 1 : vector<32x32xf32>, vector<32x32xf32> -> vector<32x64xf32>
    %cst_11 = arith.constant dense<0.000000e+00> : vector<1x64xf32>
    %26 = tpu.matmul %23, %25, %cst_11 {dimension_numbers = #tpu.dot_dimension_numbers<[1], [0], [0], [1], [0, 0, 1, 1], [], []>} : vector<1x32xf32>, vector<32x64xf32>, vector<1x64xf32> -> vector<1x64xf32>
    %27 = vector.extract_strided_slice %26 {offsets = [0, 0], sizes = [1, 32], strides = [1, 1]} : vector<1x64xf32> to vector<1x32xf32>
    %cst_12 = arith.constant 3.125000e-02 : f32
    %28 = vector.broadcast %cst_12 : f32 to vector<1x32xf32>
    %29 = arith.mulf %27, %28 : vector<1x32xf32>
    %30 = vector.extract_strided_slice %26 {offsets = [0, 32], sizes = [1, 32], strides = [1, 1]} : vector<1x64xf32> to vector<1x32xf32>
    %cst_13 = arith.constant 3.125000e-02 : f32
    %31 = vector.broadcast %cst_13 : f32 to vector<1x32xf32>
    %32 = arith.mulf %30, %31 : vector<1x32xf32>
    %33 = arith.mulf %29, %29 : vector<1x32xf32>
    %34 = arith.subf %32, %33 : vector<1x32xf32>
    %cst_14 = arith.constant 0.000000e+00 : f32
    %35 = vector.broadcast %cst_14 : f32 to vector<1x32xf32>
    %36 = arith.maximumf %34, %35 : vector<1x32xf32>
    %37 = vector.broadcast %29 : vector<1x32xf32> to vector<32x32xf32>
    %38 = arith.subf %22, %37 : vector<32x32xf32>
    %cst_15 = arith.constant 9.99999974E-6 : f32
    %39 = vector.broadcast %cst_15 : f32 to vector<1x32xf32>
    %40 = arith.addf %36, %39 : vector<1x32xf32>
    %41 = math.rsqrt %40 : vector<1x32xf32>
    %42 = vector.broadcast %41 : vector<1x32xf32> to vector<32x32xf32>
    %43 = arith.mulf %38, %42 : vector<32x32xf32>
    %cst_16 = arith.constant 0.00999999977 : f32
    %44 = vector.broadcast %cst_16 : f32 to vector<32x32xf32>
    %45 = arith.mulf %44, %43 : vector<32x32xf32>
    %46 = arith.maximumf %43, %45 : vector<32x32xf32>
    %47 = arith.truncf %46 : vector<32x32xf32> to vector<32x32xbf16>
    %c0_17 = arith.constant 0 : index
    %c0_18 = arith.constant 0 : index
    %48 = vector.load %arg4[%c0_17, %c0_18] : memref<32x32xbf16, #tpu.memory_space<vmem>>, vector<32x32xbf16>
    %cst_19 = arith.constant dense<0.000000e+00> : vector<32x32xf32>
    %49 = tpu.matmul %47, %48, %cst_19 {dimension_numbers = #tpu.dot_dimension_numbers<[1], [0], [0], [1], [0, 0, 1, 1], [], []>} : vector<32x32xbf16>, vector<32x32xbf16>, vector<32x32xf32> -> vector<32x32xf32>
    %cst_20 = arith.constant 1.000000e+00 : f32
    %50 = vector.broadcast %cst_20 : f32 to vector<1x32xf32>
    %51 = arith.mulf %49, %49 : vector<32x32xf32>
    %52 = tpu.concatenate %49, %51 in 1 : vector<32x32xf32>, vector<32x32xf32> -> vector<32x64xf32>
    %cst_21 = arith.constant dense<0.000000e+00> : vector<1x64xf32>
    %53 = tpu.matmul %50, %52, %cst_21 {dimension_numbers = #tpu.dot_dimension_numbers<[1], [0], [0], [1], [0, 0, 1, 1], [], []>} : vector<1x32xf32>, vector<32x64xf32>, vector<1x64xf32> -> vector<1x64xf32>
    %54 = vector.extract_strided_slice %53 {offsets = [0, 0], sizes = [1, 32], strides = [1, 1]} : vector<1x64xf32> to vector<1x32xf32>
    %cst_22 = arith.constant 3.125000e-02 : f32
    %55 = vector.broadcast %cst_22 : f32 to vector<1x32xf32>
    %56 = arith.mulf %54, %55 : vector<1x32xf32>
    %57 = vector.extract_strided_slice %53 {offsets = [0, 32], sizes = [1, 32], strides = [1, 1]} : vector<1x64xf32> to vector<1x32xf32>
    %cst_23 = arith.constant 3.125000e-02 : f32
    %58 = vector.broadcast %cst_23 : f32 to vector<1x32xf32>
    %59 = arith.mulf %57, %58 : vector<1x32xf32>
    %60 = arith.mulf %56, %56 : vector<1x32xf32>
    %61 = arith.subf %59, %60 : vector<1x32xf32>
    %cst_24 = arith.constant 0.000000e+00 : f32
    %62 = vector.broadcast %cst_24 : f32 to vector<1x32xf32>
    %63 = arith.maximumf %61, %62 : vector<1x32xf32>
    %64 = vector.broadcast %56 : vector<1x32xf32> to vector<32x32xf32>
    %65 = arith.subf %49, %64 : vector<32x32xf32>
    %cst_25 = arith.constant 9.99999974E-6 : f32
    %66 = vector.broadcast %cst_25 : f32 to vector<1x32xf32>
    %67 = arith.addf %63, %66 : vector<1x32xf32>
    %68 = math.rsqrt %67 : vector<1x32xf32>
    %69 = vector.broadcast %68 : vector<1x32xf32> to vector<32x32xf32>
    %70 = arith.mulf %65, %69 : vector<32x32xf32>
    %cst_26 = arith.constant 0.00999999977 : f32
    %71 = vector.broadcast %cst_26 : f32 to vector<32x32xf32>
    %72 = arith.mulf %71, %70 : vector<32x32xf32>
    %73 = arith.maximumf %70, %72 : vector<32x32xf32>
    %74 = arith.truncf %73 : vector<32x32xf32> to vector<32x32xbf16>
    %c0_27 = arith.constant 0 : index
    %c0_28 = arith.constant 0 : index
    %75 = vector.load %arg5[%c0_27, %c0_28] : memref<32x32xbf16, #tpu.memory_space<vmem>>, vector<32x32xbf16>
    %cst_29 = arith.constant dense<0.000000e+00> : vector<32x32xf32>
    %76 = tpu.matmul %74, %75, %cst_29 {dimension_numbers = #tpu.dot_dimension_numbers<[1], [0], [0], [1], [0, 0, 1, 1], [], []>} : vector<32x32xbf16>, vector<32x32xbf16>, vector<32x32xf32> -> vector<32x32xf32>
    %cst_30 = arith.constant 1.000000e+00 : f32
    %77 = vector.broadcast %cst_30 : f32 to vector<1x32xf32>
    %78 = arith.mulf %76, %76 : vector<32x32xf32>
    %79 = tpu.concatenate %76, %78 in 1 : vector<32x32xf32>, vector<32x32xf32> -> vector<32x64xf32>
    %cst_31 = arith.constant dense<0.000000e+00> : vector<1x64xf32>
    %80 = tpu.matmul %77, %79, %cst_31 {dimension_numbers = #tpu.dot_dimension_numbers<[1], [0], [0], [1], [0, 0, 1, 1], [], []>} : vector<1x32xf32>, vector<32x64xf32>, vector<1x64xf32> -> vector<1x64xf32>
    %81 = vector.extract_strided_slice %80 {offsets = [0, 0], sizes = [1, 32], strides = [1, 1]} : vector<1x64xf32> to vector<1x32xf32>
    %cst_32 = arith.constant 3.125000e-02 : f32
    %82 = vector.broadcast %cst_32 : f32 to vector<1x32xf32>
    %83 = arith.mulf %81, %82 : vector<1x32xf32>
    %84 = vector.extract_strided_slice %80 {offsets = [0, 32], sizes = [1, 32], strides = [1, 1]} : vector<1x64xf32> to vector<1x32xf32>
    %cst_33 = arith.constant 3.125000e-02 : f32
    %85 = vector.broadcast %cst_33 : f32 to vector<1x32xf32>
    %86 = arith.mulf %84, %85 : vector<1x32xf32>
    %87 = arith.mulf %83, %83 : vector<1x32xf32>
    %88 = arith.subf %86, %87 : vector<1x32xf32>
    %cst_34 = arith.constant 0.000000e+00 : f32
    %89 = vector.broadcast %cst_34 : f32 to vector<1x32xf32>
    %90 = arith.maximumf %88, %89 : vector<1x32xf32>
    %91 = vector.broadcast %83 : vector<1x32xf32> to vector<32x32xf32>
    %92 = arith.subf %76, %91 : vector<32x32xf32>
    %cst_35 = arith.constant 9.99999974E-6 : f32
    %93 = vector.broadcast %cst_35 : f32 to vector<1x32xf32>
    %94 = arith.addf %90, %93 : vector<1x32xf32>
    %95 = math.rsqrt %94 : vector<1x32xf32>
    %96 = vector.broadcast %95 : vector<1x32xf32> to vector<32x32xf32>
    %97 = arith.mulf %92, %96 : vector<32x32xf32>
    %cst_36 = arith.constant 0.00999999977 : f32
    %98 = vector.broadcast %cst_36 : f32 to vector<32x32xf32>
    %99 = arith.mulf %98, %97 : vector<32x32xf32>
    %100 = arith.maximumf %97, %99 : vector<32x32xf32>
    %101 = vector.shape_cast %100 : vector<32x32xf32> to vector<2x16x32xf32>
    %cst_37 = arith.constant dense<0xFF800000> : vector<16x32xf32>
    %102 = vector.multi_reduction <maximumf>, %101, %cst_37 [0] : vector<2x16x32xf32> to vector<16x32xf32>
    %103 = arith.truncf %102 : vector<16x32xf32> to vector<16x32xbf16>
    %c0_38 = arith.constant 0 : index
    %c0_39 = arith.constant 0 : index
    %104 = vector.load %arg6[%c0_38, %c0_39] : memref<32x64xbf16, #tpu.memory_space<vmem>>, vector<32x64xbf16>
    %cst_40 = arith.constant dense<0.000000e+00> : vector<16x64xf32>
    %105 = tpu.matmul %103, %104, %cst_40 {dimension_numbers = #tpu.dot_dimension_numbers<[1], [0], [0], [1], [0, 0, 1, 1], [], []>} : vector<16x32xbf16>, vector<32x64xbf16>, vector<16x64xf32> -> vector<16x64xf32>
    %106 = vector.extract_strided_slice %105 {offsets = [0, 0], sizes = [16, 32], strides = [1, 1]} : vector<16x64xf32> to vector<16x32xf32>
    %107 = vector.extract_strided_slice %105 {offsets = [0, 32], sizes = [16, 32], strides = [1, 1]} : vector<16x64xf32> to vector<16x32xf32>
    %108 = arith.truncf %106 : vector<16x32xf32> to vector<16x32xbf16>
    %cst_41 = arith.constant dense<0.000000e+00> : vector<32x32xf32>
    %109 = tpu.matmul %10, %108, %cst_41 {dimension_numbers = #tpu.dot_dimension_numbers<[1], [0], [0], [1], [0, 0, 1, 1], [], []>} : vector<32x16xbf16>, vector<16x32xbf16>, vector<32x32xf32> -> vector<32x32xf32>
    %110 = vector.shape_cast %109 : vector<32x32xf32> to vector<2x16x32xf32>
    %111 = vector.shape_cast %107 : vector<16x32xf32> to vector<1x16x32xf32>
    %112 = vector.broadcast %111 : vector<1x16x32xf32> to vector<2x16x32xf32>
    %113 = arith.addf %110, %112 : vector<2x16x32xf32>
    %114 = vector.shape_cast %113 : vector<2x16x32xf32> to vector<32x32xf32>
    %cst_42 = arith.constant 1.000000e+00 : f32
    %115 = vector.broadcast %cst_42 : f32 to vector<1x32xf32>
    %116 = arith.mulf %114, %114 : vector<32x32xf32>
    %117 = tpu.concatenate %114, %116 in 1 : vector<32x32xf32>, vector<32x32xf32> -> vector<32x64xf32>
    %cst_43 = arith.constant dense<0.000000e+00> : vector<1x64xf32>
    %118 = tpu.matmul %115, %117, %cst_43 {dimension_numbers = #tpu.dot_dimension_numbers<[1], [0], [0], [1], [0, 0, 1, 1], [], []>} : vector<1x32xf32>, vector<32x64xf32>, vector<1x64xf32> -> vector<1x64xf32>
    %119 = vector.extract_strided_slice %118 {offsets = [0, 0], sizes = [1, 32], strides = [1, 1]} : vector<1x64xf32> to vector<1x32xf32>
    %cst_44 = arith.constant 3.125000e-02 : f32
    %120 = vector.broadcast %cst_44 : f32 to vector<1x32xf32>
    %121 = arith.mulf %119, %120 : vector<1x32xf32>
    %122 = vector.extract_strided_slice %118 {offsets = [0, 32], sizes = [1, 32], strides = [1, 1]} : vector<1x64xf32> to vector<1x32xf32>
    %cst_45 = arith.constant 3.125000e-02 : f32
    %123 = vector.broadcast %cst_45 : f32 to vector<1x32xf32>
    %124 = arith.mulf %122, %123 : vector<1x32xf32>
    %125 = arith.mulf %121, %121 : vector<1x32xf32>
    %126 = arith.subf %124, %125 : vector<1x32xf32>
    %cst_46 = arith.constant 0.000000e+00 : f32
    %127 = vector.broadcast %cst_46 : f32 to vector<1x32xf32>
    %128 = arith.maximumf %126, %127 : vector<1x32xf32>
    %129 = vector.broadcast %121 : vector<1x32xf32> to vector<32x32xf32>
    %130 = arith.subf %114, %129 : vector<32x32xf32>
    %cst_47 = arith.constant 9.99999974E-6 : f32
    %131 = vector.broadcast %cst_47 : f32 to vector<1x32xf32>
    %132 = arith.addf %128, %131 : vector<1x32xf32>
    %133 = math.rsqrt %132 : vector<1x32xf32>
    %134 = vector.broadcast %133 : vector<1x32xf32> to vector<32x32xf32>
    %135 = arith.mulf %130, %134 : vector<32x32xf32>
    %cst_48 = arith.constant 0.00999999977 : f32
    %136 = vector.broadcast %cst_48 : f32 to vector<32x32xf32>
    %137 = arith.mulf %136, %135 : vector<32x32xf32>
    %138 = arith.maximumf %135, %137 : vector<32x32xf32>
    %139 = arith.truncf %138 : vector<32x32xf32> to vector<32x32xbf16>
    %c0_49 = arith.constant 0 : index
    %c0_50 = arith.constant 0 : index
    %140 = vector.load %arg7[%c0_49, %c0_50] : memref<32x32xbf16, #tpu.memory_space<vmem>>, vector<32x32xbf16>
    %cst_51 = arith.constant dense<0.000000e+00> : vector<32x32xf32>
    %141 = tpu.matmul %139, %140, %cst_51 {dimension_numbers = #tpu.dot_dimension_numbers<[1], [0], [0], [1], [0, 0, 1, 1], [], []>} : vector<32x32xbf16>, vector<32x32xbf16>, vector<32x32xf32> -> vector<32x32xf32>
    %cst_52 = arith.constant 1.000000e+00 : f32
    %142 = vector.broadcast %cst_52 : f32 to vector<1x32xf32>
    %143 = arith.mulf %141, %141 : vector<32x32xf32>
    %144 = tpu.concatenate %141, %143 in 1 : vector<32x32xf32>, vector<32x32xf32> -> vector<32x64xf32>
    %cst_53 = arith.constant dense<0.000000e+00> : vector<1x64xf32>
    %145 = tpu.matmul %142, %144, %cst_53 {dimension_numbers = #tpu.dot_dimension_numbers<[1], [0], [0], [1], [0, 0, 1, 1], [], []>} : vector<1x32xf32>, vector<32x64xf32>, vector<1x64xf32> -> vector<1x64xf32>
    %146 = vector.extract_strided_slice %145 {offsets = [0, 0], sizes = [1, 32], strides = [1, 1]} : vector<1x64xf32> to vector<1x32xf32>
    %cst_54 = arith.constant 3.125000e-02 : f32
    %147 = vector.broadcast %cst_54 : f32 to vector<1x32xf32>
    %148 = arith.mulf %146, %147 : vector<1x32xf32>
    %149 = vector.extract_strided_slice %145 {offsets = [0, 32], sizes = [1, 32], strides = [1, 1]} : vector<1x64xf32> to vector<1x32xf32>
    %cst_55 = arith.constant 3.125000e-02 : f32
    %150 = vector.broadcast %cst_55 : f32 to vector<1x32xf32>
    %151 = arith.mulf %149, %150 : vector<1x32xf32>
    %152 = arith.mulf %148, %148 : vector<1x32xf32>
    %153 = arith.subf %151, %152 : vector<1x32xf32>
    %cst_56 = arith.constant 0.000000e+00 : f32
    %154 = vector.broadcast %cst_56 : f32 to vector<1x32xf32>
    %155 = arith.maximumf %153, %154 : vector<1x32xf32>
    %156 = vector.broadcast %148 : vector<1x32xf32> to vector<32x32xf32>
    %157 = arith.subf %141, %156 : vector<32x32xf32>
    %cst_57 = arith.constant 9.99999974E-6 : f32
    %158 = vector.broadcast %cst_57 : f32 to vector<1x32xf32>
    %159 = arith.addf %155, %158 : vector<1x32xf32>
    %160 = math.rsqrt %159 : vector<1x32xf32>
    %161 = vector.broadcast %160 : vector<1x32xf32> to vector<32x32xf32>
    %162 = arith.mulf %157, %161 : vector<32x32xf32>
    %cst_58 = arith.constant 0.00999999977 : f32
    %163 = vector.broadcast %cst_58 : f32 to vector<32x32xf32>
    %164 = arith.mulf %163, %162 : vector<32x32xf32>
    %165 = arith.maximumf %162, %164 : vector<32x32xf32>
    %166 = arith.truncf %165 : vector<32x32xf32> to vector<32x32xbf16>
    %c0_59 = arith.constant 0 : index
    %c0_60 = arith.constant 0 : index
    %167 = vector.load %arg8[%c0_59, %c0_60] : memref<32x32xbf16, #tpu.memory_space<vmem>>, vector<32x32xbf16>
    %cst_61 = arith.constant dense<0.000000e+00> : vector<32x32xf32>
    %168 = tpu.matmul %166, %167, %cst_61 {dimension_numbers = #tpu.dot_dimension_numbers<[1], [0], [0], [1], [0, 0, 1, 1], [], []>} : vector<32x32xbf16>, vector<32x32xbf16>, vector<32x32xf32> -> vector<32x32xf32>
    %cst_62 = arith.constant 1.000000e+00 : f32
    %169 = vector.broadcast %cst_62 : f32 to vector<1x32xf32>
    %170 = arith.mulf %168, %168 : vector<32x32xf32>
    %171 = tpu.concatenate %168, %170 in 1 : vector<32x32xf32>, vector<32x32xf32> -> vector<32x64xf32>
    %cst_63 = arith.constant dense<0.000000e+00> : vector<1x64xf32>
    %172 = tpu.matmul %169, %171, %cst_63 {dimension_numbers = #tpu.dot_dimension_numbers<[1], [0], [0], [1], [0, 0, 1, 1], [], []>} : vector<1x32xf32>, vector<32x64xf32>, vector<1x64xf32> -> vector<1x64xf32>
    %173 = vector.extract_strided_slice %172 {offsets = [0, 0], sizes = [1, 32], strides = [1, 1]} : vector<1x64xf32> to vector<1x32xf32>
    %cst_64 = arith.constant 3.125000e-02 : f32
    %174 = vector.broadcast %cst_64 : f32 to vector<1x32xf32>
    %175 = arith.mulf %173, %174 : vector<1x32xf32>
    %176 = vector.extract_strided_slice %172 {offsets = [0, 32], sizes = [1, 32], strides = [1, 1]} : vector<1x64xf32> to vector<1x32xf32>
    %cst_65 = arith.constant 3.125000e-02 : f32
    %177 = vector.broadcast %cst_65 : f32 to vector<1x32xf32>
    %178 = arith.mulf %176, %177 : vector<1x32xf32>
    %179 = arith.mulf %175, %175 : vector<1x32xf32>
    %180 = arith.subf %178, %179 : vector<1x32xf32>
    %cst_66 = arith.constant 0.000000e+00 : f32
    %181 = vector.broadcast %cst_66 : f32 to vector<1x32xf32>
    %182 = arith.maximumf %180, %181 : vector<1x32xf32>
    %183 = vector.broadcast %175 : vector<1x32xf32> to vector<32x32xf32>
    %184 = arith.subf %168, %183 : vector<32x32xf32>
    %cst_67 = arith.constant 9.99999974E-6 : f32
    %185 = vector.broadcast %cst_67 : f32 to vector<1x32xf32>
    %186 = arith.addf %182, %185 : vector<1x32xf32>
    %187 = math.rsqrt %186 : vector<1x32xf32>
    %188 = vector.broadcast %187 : vector<1x32xf32> to vector<32x32xf32>
    %189 = arith.mulf %184, %188 : vector<32x32xf32>
    %cst_68 = arith.constant 0.00999999977 : f32
    %190 = vector.broadcast %cst_68 : f32 to vector<32x32xf32>
    %191 = arith.mulf %190, %189 : vector<32x32xf32>
    %192 = arith.maximumf %189, %191 : vector<32x32xf32>
    %193 = vector.shape_cast %192 : vector<32x32xf32> to vector<2x16x32xf32>
    %cst_69 = arith.constant dense<0xFF800000> : vector<16x32xf32>
    %194 = vector.multi_reduction <maximumf>, %193, %cst_69 [0] : vector<2x16x32xf32> to vector<16x32xf32>
    %195 = arith.truncf %194 : vector<16x32xf32> to vector<16x32xbf16>
    %c0_70 = arith.constant 0 : index
    %c0_71 = arith.constant 0 : index
    %196 = vector.load %arg9[%c0_70, %c0_71] : memref<32x128xbf16, #tpu.memory_space<vmem>>, vector<32x128xbf16>
    %cst_72 = arith.constant dense<0.000000e+00> : vector<16x128xf32>
    %197 = tpu.matmul %195, %196, %cst_72 {dimension_numbers = #tpu.dot_dimension_numbers<[1], [0], [0], [1], [0, 0, 1, 1], [], []>} : vector<16x32xbf16>, vector<32x128xbf16>, vector<16x128xf32> -> vector<16x128xf32>
    %198 = vector.extract_strided_slice %197 {offsets = [0, 0], sizes = [16, 64], strides = [1, 1]} : vector<16x128xf32> to vector<16x64xf32>
    %199 = vector.extract_strided_slice %197 {offsets = [0, 64], sizes = [16, 64], strides = [1, 1]} : vector<16x128xf32> to vector<16x64xf32>
    %200 = arith.truncf %198 : vector<16x64xf32> to vector<16x64xbf16>
    %cst_73 = arith.constant dense<0.000000e+00> : vector<32x64xf32>
    %201 = tpu.matmul %10, %200, %cst_73 {dimension_numbers = #tpu.dot_dimension_numbers<[1], [0], [0], [1], [0, 0, 1, 1], [], []>} : vector<32x16xbf16>, vector<16x64xbf16>, vector<32x64xf32> -> vector<32x64xf32>
    %202 = vector.shape_cast %201 : vector<32x64xf32> to vector<2x16x64xf32>
    %203 = vector.shape_cast %199 : vector<16x64xf32> to vector<1x16x64xf32>
    %204 = vector.broadcast %203 : vector<1x16x64xf32> to vector<2x16x64xf32>
    %205 = arith.addf %202, %204 : vector<2x16x64xf32>
    %206 = vector.shape_cast %205 : vector<2x16x64xf32> to vector<32x64xf32>
    %cst_74 = arith.constant 1.000000e+00 : f32
    %207 = vector.broadcast %cst_74 : f32 to vector<1x32xf32>
    %208 = arith.mulf %206, %206 : vector<32x64xf32>
    %209 = tpu.concatenate %206, %208 in 1 : vector<32x64xf32>, vector<32x64xf32> -> vector<32x128xf32>
    %cst_75 = arith.constant dense<0.000000e+00> : vector<1x128xf32>
    %210 = tpu.matmul %207, %209, %cst_75 {dimension_numbers = #tpu.dot_dimension_numbers<[1], [0], [0], [1], [0, 0, 1, 1], [], []>} : vector<1x32xf32>, vector<32x128xf32>, vector<1x128xf32> -> vector<1x128xf32>
    %211 = vector.extract_strided_slice %210 {offsets = [0, 0], sizes = [1, 64], strides = [1, 1]} : vector<1x128xf32> to vector<1x64xf32>
    %cst_76 = arith.constant 3.125000e-02 : f32
    %212 = vector.broadcast %cst_76 : f32 to vector<1x64xf32>
    %213 = arith.mulf %211, %212 : vector<1x64xf32>
    %214 = vector.extract_strided_slice %210 {offsets = [0, 64], sizes = [1, 64], strides = [1, 1]} : vector<1x128xf32> to vector<1x64xf32>
    %cst_77 = arith.constant 3.125000e-02 : f32
    %215 = vector.broadcast %cst_77 : f32 to vector<1x64xf32>
    %216 = arith.mulf %214, %215 : vector<1x64xf32>
    %217 = arith.mulf %213, %213 : vector<1x64xf32>
    %218 = arith.subf %216, %217 : vector<1x64xf32>
    %cst_78 = arith.constant 0.000000e+00 : f32
    %219 = vector.broadcast %cst_78 : f32 to vector<1x64xf32>
    %220 = arith.maximumf %218, %219 : vector<1x64xf32>
    %221 = vector.broadcast %213 : vector<1x64xf32> to vector<32x64xf32>
    %222 = arith.subf %206, %221 : vector<32x64xf32>
    %cst_79 = arith.constant 9.99999974E-6 : f32
    %223 = vector.broadcast %cst_79 : f32 to vector<1x64xf32>
    %224 = arith.addf %220, %223 : vector<1x64xf32>
    %225 = math.rsqrt %224 : vector<1x64xf32>
    %226 = vector.broadcast %225 : vector<1x64xf32> to vector<32x64xf32>
    %227 = arith.mulf %222, %226 : vector<32x64xf32>
    %cst_80 = arith.constant 0.00999999977 : f32
    %228 = vector.broadcast %cst_80 : f32 to vector<32x64xf32>
    %229 = arith.mulf %228, %227 : vector<32x64xf32>
    %230 = arith.maximumf %227, %229 : vector<32x64xf32>
    %231 = arith.truncf %230 : vector<32x64xf32> to vector<32x64xbf16>
    %c0_81 = arith.constant 0 : index
    %c0_82 = arith.constant 0 : index
    %232 = vector.load %arg10[%c0_81, %c0_82] : memref<64x64xbf16, #tpu.memory_space<vmem>>, vector<64x64xbf16>
    %cst_83 = arith.constant dense<0.000000e+00> : vector<32x64xf32>
    %233 = tpu.matmul %231, %232, %cst_83 {dimension_numbers = #tpu.dot_dimension_numbers<[1], [0], [0], [1], [0, 0, 1, 1], [], []>} : vector<32x64xbf16>, vector<64x64xbf16>, vector<32x64xf32> -> vector<32x64xf32>
    %cst_84 = arith.constant 1.000000e+00 : f32
    %234 = vector.broadcast %cst_84 : f32 to vector<1x32xf32>
    %235 = arith.mulf %233, %233 : vector<32x64xf32>
    %236 = tpu.concatenate %233, %235 in 1 : vector<32x64xf32>, vector<32x64xf32> -> vector<32x128xf32>
    %cst_85 = arith.constant dense<0.000000e+00> : vector<1x128xf32>
    %237 = tpu.matmul %234, %236, %cst_85 {dimension_numbers = #tpu.dot_dimension_numbers<[1], [0], [0], [1], [0, 0, 1, 1], [], []>} : vector<1x32xf32>, vector<32x128xf32>, vector<1x128xf32> -> vector<1x128xf32>
    %238 = vector.extract_strided_slice %237 {offsets = [0, 0], sizes = [1, 64], strides = [1, 1]} : vector<1x128xf32> to vector<1x64xf32>
    %cst_86 = arith.constant 3.125000e-02 : f32
    %239 = vector.broadcast %cst_86 : f32 to vector<1x64xf32>
    %240 = arith.mulf %238, %239 : vector<1x64xf32>
    %241 = vector.extract_strided_slice %237 {offsets = [0, 64], sizes = [1, 64], strides = [1, 1]} : vector<1x128xf32> to vector<1x64xf32>
    %cst_87 = arith.constant 3.125000e-02 : f32
    %242 = vector.broadcast %cst_87 : f32 to vector<1x64xf32>
    %243 = arith.mulf %241, %242 : vector<1x64xf32>
    %244 = arith.mulf %240, %240 : vector<1x64xf32>
    %245 = arith.subf %243, %244 : vector<1x64xf32>
    %cst_88 = arith.constant 0.000000e+00 : f32
    %246 = vector.broadcast %cst_88 : f32 to vector<1x64xf32>
    %247 = arith.maximumf %245, %246 : vector<1x64xf32>
    %248 = vector.broadcast %240 : vector<1x64xf32> to vector<32x64xf32>
    %249 = arith.subf %233, %248 : vector<32x64xf32>
    %cst_89 = arith.constant 9.99999974E-6 : f32
    %250 = vector.broadcast %cst_89 : f32 to vector<1x64xf32>
    %251 = arith.addf %247, %250 : vector<1x64xf32>
    %252 = math.rsqrt %251 : vector<1x64xf32>
    %253 = vector.broadcast %252 : vector<1x64xf32> to vector<32x64xf32>
    %254 = arith.mulf %249, %253 : vector<32x64xf32>
    %cst_90 = arith.constant 0.00999999977 : f32
    %255 = vector.broadcast %cst_90 : f32 to vector<32x64xf32>
    %256 = arith.mulf %255, %254 : vector<32x64xf32>
    %257 = arith.maximumf %254, %256 : vector<32x64xf32>
    %258 = arith.truncf %257 : vector<32x64xf32> to vector<32x64xbf16>
    %c0_91 = arith.constant 0 : index
    %c0_92 = arith.constant 0 : index
    %259 = vector.load %arg11[%c0_91, %c0_92] : memref<64x64xbf16, #tpu.memory_space<vmem>>, vector<64x64xbf16>
    %cst_93 = arith.constant dense<0.000000e+00> : vector<32x64xf32>
    %260 = tpu.matmul %258, %259, %cst_93 {dimension_numbers = #tpu.dot_dimension_numbers<[1], [0], [0], [1], [0, 0, 1, 1], [], []>} : vector<32x64xbf16>, vector<64x64xbf16>, vector<32x64xf32> -> vector<32x64xf32>
    %cst_94 = arith.constant 1.000000e+00 : f32
    %261 = vector.broadcast %cst_94 : f32 to vector<1x32xf32>
    %262 = arith.mulf %260, %260 : vector<32x64xf32>
    %263 = tpu.concatenate %260, %262 in 1 : vector<32x64xf32>, vector<32x64xf32> -> vector<32x128xf32>
    %cst_95 = arith.constant dense<0.000000e+00> : vector<1x128xf32>
    %264 = tpu.matmul %261, %263, %cst_95 {dimension_numbers = #tpu.dot_dimension_numbers<[1], [0], [0], [1], [0, 0, 1, 1], [], []>} : vector<1x32xf32>, vector<32x128xf32>, vector<1x128xf32> -> vector<1x128xf32>
    %265 = vector.extract_strided_slice %264 {offsets = [0, 0], sizes = [1, 64], strides = [1, 1]} : vector<1x128xf32> to vector<1x64xf32>
    %cst_96 = arith.constant 3.125000e-02 : f32
    %266 = vector.broadcast %cst_96 : f32 to vector<1x64xf32>
    %267 = arith.mulf %265, %266 : vector<1x64xf32>
    %268 = vector.extract_strided_slice %264 {offsets = [0, 64], sizes = [1, 64], strides = [1, 1]} : vector<1x128xf32> to vector<1x64xf32>
    %cst_97 = arith.constant 3.125000e-02 : f32
    %269 = vector.broadcast %cst_97 : f32 to vector<1x64xf32>
    %270 = arith.mulf %268, %269 : vector<1x64xf32>
    %271 = arith.mulf %267, %267 : vector<1x64xf32>
    %272 = arith.subf %270, %271 : vector<1x64xf32>
    %cst_98 = arith.constant 0.000000e+00 : f32
    %273 = vector.broadcast %cst_98 : f32 to vector<1x64xf32>
    %274 = arith.maximumf %272, %273 : vector<1x64xf32>
    %275 = vector.broadcast %267 : vector<1x64xf32> to vector<32x64xf32>
    %276 = arith.subf %260, %275 : vector<32x64xf32>
    %cst_99 = arith.constant 9.99999974E-6 : f32
    %277 = vector.broadcast %cst_99 : f32 to vector<1x64xf32>
    %278 = arith.addf %274, %277 : vector<1x64xf32>
    %279 = math.rsqrt %278 : vector<1x64xf32>
    %280 = vector.broadcast %279 : vector<1x64xf32> to vector<32x64xf32>
    %281 = arith.mulf %276, %280 : vector<32x64xf32>
    %cst_100 = arith.constant 0.00999999977 : f32
    %282 = vector.broadcast %cst_100 : f32 to vector<32x64xf32>
    %283 = arith.mulf %282, %281 : vector<32x64xf32>
    %284 = arith.maximumf %281, %283 : vector<32x64xf32>
    %285 = vector.shape_cast %284 : vector<32x64xf32> to vector<2x16x64xf32>
    %cst_101 = arith.constant dense<0xFF800000> : vector<16x64xf32>
    %286 = vector.multi_reduction <maximumf>, %285, %cst_101 [0] : vector<2x16x64xf32> to vector<16x64xf32>
    %287 = arith.truncf %286 : vector<16x64xf32> to vector<16x64xbf16>
    %c0_102 = arith.constant 0 : index
    %c0_103 = arith.constant 0 : index
    %288 = vector.load %arg12[%c0_102, %c0_103] : memref<64x64xbf16, #tpu.memory_space<vmem>>, vector<64x64xbf16>
    %cst_104 = arith.constant dense<0.000000e+00> : vector<16x64xf32>
    %289 = tpu.matmul %287, %288, %cst_104 {dimension_numbers = #tpu.dot_dimension_numbers<[1], [0], [0], [1], [0, 0, 1, 1], [], []>} : vector<16x64xbf16>, vector<64x64xbf16>, vector<16x64xf32> -> vector<16x64xf32>
    %cst_105 = arith.constant 1.000000e+00 : f32
    %290 = vector.broadcast %cst_105 : f32 to vector<1x16xf32>
    %291 = arith.mulf %289, %289 : vector<16x64xf32>
    %292 = tpu.concatenate %289, %291 in 1 : vector<16x64xf32>, vector<16x64xf32> -> vector<16x128xf32>
    %cst_106 = arith.constant dense<0.000000e+00> : vector<1x128xf32>
    %293 = tpu.matmul %290, %292, %cst_106 {dimension_numbers = #tpu.dot_dimension_numbers<[1], [0], [0], [1], [0, 0, 1, 1], [], []>} : vector<1x16xf32>, vector<16x128xf32>, vector<1x128xf32> -> vector<1x128xf32>
    %294 = vector.extract_strided_slice %293 {offsets = [0, 0], sizes = [1, 64], strides = [1, 1]} : vector<1x128xf32> to vector<1x64xf32>
    %cst_107 = arith.constant 6.250000e-02 : f32
    %295 = vector.broadcast %cst_107 : f32 to vector<1x64xf32>
    %296 = arith.mulf %294, %295 : vector<1x64xf32>
    %297 = vector.extract_strided_slice %293 {offsets = [0, 64], sizes = [1, 64], strides = [1, 1]} : vector<1x128xf32> to vector<1x64xf32>
    %cst_108 = arith.constant 6.250000e-02 : f32
    %298 = vector.broadcast %cst_108 : f32 to vector<1x64xf32>
    %299 = arith.mulf %297, %298 : vector<1x64xf32>
    %300 = arith.mulf %296, %296 : vector<1x64xf32>
    %301 = arith.subf %299, %300 : vector<1x64xf32>
    %cst_109 = arith.constant 0.000000e+00 : f32
    %302 = vector.broadcast %cst_109 : f32 to vector<1x64xf32>
    %303 = arith.maximumf %301, %302 : vector<1x64xf32>
    %304 = vector.broadcast %296 : vector<1x64xf32> to vector<16x64xf32>
    %305 = arith.subf %289, %304 : vector<16x64xf32>
    %cst_110 = arith.constant 9.99999974E-6 : f32
    %306 = vector.broadcast %cst_110 : f32 to vector<1x64xf32>
    %307 = arith.addf %303, %306 : vector<1x64xf32>
    %308 = math.rsqrt %307 : vector<1x64xf32>
    %309 = vector.broadcast %308 : vector<1x64xf32> to vector<16x64xf32>
    %310 = arith.mulf %305, %309 : vector<16x64xf32>
    %311 = arith.truncf %310 : vector<16x64xf32> to vector<16x64xbf16>
    %c0_111 = arith.constant 0 : index
    %c0_112 = arith.constant 0 : index
    %312 = vector.load %arg13[%c0_111, %c0_112] : memref<64x64xbf16, #tpu.memory_space<vmem>>, vector<64x64xbf16>
    %cst_113 = arith.constant dense<0.000000e+00> : vector<16x64xf32>
    %313 = tpu.matmul %311, %312, %cst_113 {dimension_numbers = #tpu.dot_dimension_numbers<[1], [0], [0], [1], [0, 0, 1, 1], [], []>} : vector<16x64xbf16>, vector<64x64xbf16>, vector<16x64xf32> -> vector<16x64xf32>
    %c0_114 = arith.constant 0 : index
    %c0_115 = arith.constant 0 : index
    %314 = vector.load %arg14[%c0_114, %c0_115] : memref<1x64xf32, #tpu.memory_space<vmem>>, vector<1x64xf32>
    %315 = vector.broadcast %314 : vector<1x64xf32> to vector<16x64xf32>
    %316 = arith.addf %313, %315 : vector<16x64xf32>
    %c0_116 = arith.constant 0 : index
    %c0_117 = arith.constant 0 : index
    %c0_118 = arith.constant 0 : index
    %317 = vector.load %arg15[%c0_116, %c0_117, %c0_118] : memref<1x16x64xf32, #tpu.memory_space<vmem>>, vector<1x16x64xf32>
    %318 = vector.shape_cast %317 : vector<1x16x64xf32> to vector<16x64xf32>
    %319 = vector.shape_cast %316 : vector<16x64xf32> to vector<1x16x64xf32>
    tpu.vector_store %arg15[%c0_116, %c0_117, %c0_118], %319 {strides = array<i32>} : memref<1x16x64xf32, #tpu.memory_space<vmem>>, vector<1x16x64xf32>,
    return
  }
  func.func @transform_0(%arg0: i32) -> (i32, i32, i32) {
    %c0_i32 = arith.constant 0 : i32
    %c0_i32_0 = arith.constant 0 : i32
    %c0_i32_1 = arith.constant 0 : i32
    return %arg0, %c0_i32, %c0_i32_0 : i32, i32, i32
  }
  func.func @transform_1(%arg0: i32) -> (i32, i32, i32) {
    %c0_i32 = arith.constant 0 : i32
    %c0_i32_0 = arith.constant 0 : i32
    %c0_i32_1 = arith.constant 0 : i32
    return %arg0, %c0_i32, %c0_i32_0 : i32, i32, i32
  }
  func.func @transform_2(%arg0: i32) -> (i32, i32) {
    %c0_i32 = arith.constant 0 : i32
    %c0_i32_0 = arith.constant 0 : i32
    %c0_i32_1 = arith.constant 0 : i32
    return %c0_i32, %c0_i32_0 : i32, i32
  }
  func.func @transform_3(%arg0: i32) -> (i32, i32) {
    %c0_i32 = arith.constant 0 : i32
    %c0_i32_0 = arith.constant 0 : i32
    %c0_i32_1 = arith.constant 0 : i32
    return %c0_i32, %c0_i32_0 : i32, i32
  }
  func.func @transform_4(%arg0: i32) -> (i32, i32) {
    %c0_i32 = arith.constant 0 : i32
    %c0_i32_0 = arith.constant 0 : i32
    %c0_i32_1 = arith.constant 0 : i32
    return %c0_i32, %c0_i32_0 : i32, i32
  }
  func.func @transform_5(%arg0: i32) -> (i32, i32) {
    %c0_i32 = arith.constant 0 : i32
    %c0_i32_0 = arith.constant 0 : i32
    %c0_i32_1 = arith.constant 0 : i32
    return %c0_i32, %c0_i32_0 : i32, i32
  }
  func.func @transform_6(%arg0: i32) -> (i32, i32) {
    %c0_i32 = arith.constant 0 : i32
    %c0_i32_0 = arith.constant 0 : i32
    %c0_i32_1 = arith.constant 0 : i32
    return %c0_i32, %c0_i32_0 : i32, i32
  }
  func.func @transform_7(%arg0: i32) -> (i32, i32) {
    %c0_i32 = arith.constant 0 : i32
    %c0_i32_0 = arith.constant 0 : i32
    %c0_i32_1 = arith.constant 0 : i32
    return %c0_i32, %c0_i32_0 : i32, i32
  }
  func.func @transform_8(%arg0: i32) -> (i32, i32) {
    %c0_i32 = arith.constant 0 : i32
    %c0_i32_0 = arith.constant 0 : i32
    %c0_i32_1 = arith.constant 0 : i32
    return %c0_i32, %c0_i32_0 : i32, i32
  }
  func.func @transform_9(%arg0: i32) -> (i32, i32) {
    %c0_i32 = arith.constant 0 : i32
    %c0_i32_0 = arith.constant 0 : i32
    %c0_i32_1 = arith.constant 0 : i32
    return %c0_i32, %c0_i32_0 : i32, i32
  }
  func.func @transform_10(%arg0: i32) -> (i32, i32) {
    %c0_i32 = arith.constant 0 : i32
    %c0_i32_0 = arith.constant 0 : i32
    %c0_i32_1 = arith.constant 0 : i32
    return %c0_i32, %c0_i32_0 : i32, i32
  }
  func.func @transform_11(%arg0: i32) -> (i32, i32) {
    %c0_i32 = arith.constant 0 : i32
    %c0_i32_0 = arith.constant 0 : i32
    %c0_i32_1 = arith.constant 0 : i32
    return %c0_i32, %c0_i32_0 : i32, i32
  }
  func.func @transform_12(%arg0: i32) -> (i32, i32) {
    %c0_i32 = arith.constant 0 : i32
    %c0_i32_0 = arith.constant 0 : i32
    %c0_i32_1 = arith.constant 0 : i32
    return %c0_i32, %c0_i32_0 : i32, i32
  }
  func.func @transform_13(%arg0: i32) -> (i32, i32) {
    %c0_i32 = arith.constant 0 : i32
    %c0_i32_0 = arith.constant 0 : i32
    %c0_i32_1 = arith.constant 0 : i32
    return %c0_i32, %c0_i32_0 : i32, i32
  }
  func.func @transform_14(%arg0: i32) -> (i32, i32, i32) {
    %c0_i32 = arith.constant 0 : i32
    %c0_i32_0 = arith.constant 0 : i32
    %c0_i32_1 = arith.constant 0 : i32
    return %arg0, %c0_i32, %c0_i32_0 : i32, i32, i32
  }
}

</mosaic_0001>

<bundles_post_ra>
// kernel: tpu_custom_call.1
= control target key start
LH: loop header
LB: loop body
LE: loop exit
PB: predicated region body
PF: predicated region fallthrough
CT: control target
= control target key end

     0   :  { %s4769_s0 = inlined_call_operand.vmem [shape: f32[2,16,3], index: 0, kind: input, shape index: {}]   ;;  %s4770_s1 = inlined_call_operand.vmem [shape: s32[2,32,1], index: 1, kind: input, shape index: {}]   ;;  %s4771_s2 = inlined_call_operand.vmem [shape: bf16[3,64], index: 2, kind: input, shape index: {}]   ;;  %s4772_s3 = inlined_call_operand.hbm [shape: bf16[32,32], index: 3, kind: input, shape index: {}]   ;;  %s4773_s4 = inlined_call_operand.hbm [shape: bf16[32,32], index: 4, kind: input, shape index: {}]   ;;  %s4774_s5 = inlined_call_operand.hbm [shape: bf16[32,64], index: 5, kind: input, shape index: {}]   ;;  %s4775_s6 = inlined_call_operand.hbm [shape: bf16[32,32], index: 6, kind: input, shape index: {}]   ;;  %s4776_s7 = inlined_call_operand.hbm [shape: bf16[32,32], index: 7, kind: input, shape index: {}]   ;;  %s4777_s8 = inlined_call_operand.hbm [shape: bf16[32,128], index: 8, kind: input, shape index: {}]   ;;  %s4778_s9 = inlined_call_operand.vmem [shape: bf16[64,64], index: 9, kind: input, shape index: {}]   ;;  %s4779_s10 = inlined_call_operand.vmem [shape: bf16[64,64], index: 10, kind: input, shape index: {}]   ;;  %s4780_s11 = inlined_call_operand.vmem [shape: bf16[64,64], index: 11, kind: input, shape index: {}]   ;;  %s4781_s12 = inlined_call_operand.vmem [shape: bf16[64,64], index: 12, kind: input, shape index: {}]   ;;  %s4782_s13 = inlined_call_operand.vmem [shape: f32[1,64], index: 13, kind: input, shape index: {}]   ;;  %s4783_s14 = inlined_call_operand.hbm [shape: f32[2,16,64], index: 14, kind: output, shape index: {}]  }
   0x1   :  { %4797 = sst [smem:[#allocation27_spill]] %s4773_s4 }
   0x2   :  { %4798 = sst [smem:[#allocation28_spill]] %s4782_s13 }
   0x3   :  { %4799 = sst [smem:[#allocation29_spill]] %s4783_s14 }
   0x4   :  { %19 = vsyncpa [#allocation3], 0 }
   0x5   :  { %20 = vsyncpa [#allocation6], 0 }
   0x6   :  { %21 = vsyncpa [#allocation9], 0 }
   0x7   :  { %22 = vsyncpa [#allocation12], 0 }
   0x8   :  { %23 = vsyncpa [#allocation4], 0 }
   0x9   :  { %25 = vsyncpa [#allocation4 + $0x1], 0  ;;  %s4154_s29 = smov 0   ;;  %s4156_s30 = smov 0  }
   0xa   :  { %s4158_s15 = smov 0   ;;  %s4160_s16 = smov 0  }
   0xb LB: > { %4800 = sst [smem:[#allocation19_spill]] %s4045_s29  ;;  %s4175_s17 = sadd.s32 4294967295, %s4057_s16   ;;  %s4057_s16 = sphi %s4160_s16, %s4832_s16   ;;  %s4053_s15 = sphi %s4158_s15, %s4835_s15   ;;  %s4049_s30 = sphi %s4156_s30, %s4834_s30   ;;  %s4045_s29 = sphi %s4154_s29, %s4833_s29  }
   0xc   : > { %4801 = sst [smem:[#allocation20_spill]] %s4049_s30  ;;  %s3076_s18 = sadd.s32 4294967294, %s4057_s16  }
   0xd   : > { %4802 = sst [smem:[#allocation21_spill]] %s4053_s15  ;;  %s4179_s19 = sadd.s32 1, %s4057_s16  }
   0xe   : > { %4803 = sst [smem:[#allocation22_spill]] %s4057_s16  ;;  %s342_s20 = sadd.s32 1, %s4053_s15 }
   0xf   : > { %4804 = sst [smem:[#allocation23_spill]] %s4179_s19  ;;  %s339_s21 = ssub.s32 %s4057_s16, %s4179_s19 }
  0x10   : > { %p352_p0 = scmp.ne.s32.totalorder %s4053_s15, %s4049_s30  ;;  %p340_p1 = scmp.eq.s32.totalorder %s339_s21, 0 }
  0x11   : > { %p353_p2 = scmp.eq.s32.totalorder %s4175_s17, 1  ;;  %p358_p3 = scmp.ne.s32.totalorder %s4049_s30, %s4045_s29 }
  0x12   : > { %p359_p4 = scmp.eq.s32.totalorder %s3076_s18, 1  ;;  %p3077_p7 = scmp.ge.s32.totalorder %s4057_s16, 1 }
  0x13   : > { %s4190_s22 = scalar_select %p340_p1, %s4053_s15, %s342_s20  }
  0x14   : > { %p4192_p5 = por %p353_p2, %p352_p0  ;;  %p4196_p6 = por %p359_p4, %p358_p3 }
  0x15   : > { %4805 = sst [smem:[#allocation24_spill]] %s4190_s22  ;;  %p366_p8 = scmp.lt.s32.totalorder %s4057_s16, 3 }
  0x16   : > { %s4806_s23 = scalar_select %p4192_p5, 1, 0 }
  0x17   : > { %s4808_s24 = scalar_select %p4196_p6, 1, 0 }
  0x18   : > { %4807 = sst [smem:[#allocation25_spill]] %s4806_s23  ;;  %p4790_p9 = scmp.eq.s32.totalorder %s4175_s17, 0 }
  0x19   : > { %4809 = sst [smem:[#allocation26_spill]] %s4808_s24  ;;  %p4203_p10 = pnand %p3077_p7, %p366_p8 }
  0x1a   : > { %s4059_s26 = smov [#allocation5]   ;;  %s4060_s18 = smov [#allocation8]  }
  0x1b   : > { %s4810_s25 = scalar_select %p4203_p10, 1, 0 }
  0x1c   : > { %p3579_p11 = pneg %p4203_p10  ;;  %s394_s27 = sshll.u32 %s4059_s26, 4  ;;  %s4209_s27 = int_to_ptr.vmem [resolvable:$true] %s394_s27 }
  0x1d   : > { %s420_s20 = sshll.u32 %s4060_s18, 4  ;;  %s4061_s21 = smov [#allocation2]   ;;  %s4217_s20 = int_to_ptr.vmem [resolvable:$true] %s420_s20 }
  0x1e   : > { %p4213_p12 = pnand %p4790_p9, %p3579_p11  ;;  %s4219_s22 = sshll.u32 %s4061_s21, 4  ;;  %s382_s22 = int_to_ptr.vmem [resolvable:$true] %s4219_s22 }
  0x1f   : > { %s4812_s4 = sld [smem:[#allocation27_spill]] }
  0x20   : > { %p4229_p0 = pneg %p4213_p12 }
  0x25   : > { %s3811_s24 = scalar_lea.hbm %s4812_s4, 256 }
  0x26   : > { %p3812_p13 = scmp.ne.s32.totalorder %s4812_s4, %s3811_s24  ;;  %p3818_p3 = scmp.lt.u32.totalorder %s3811_s24, %s4812_s4 }
  0x28   : > { %p3814_p1 = pnand %p4229_p0, %p3812_p13 }
  0x2a   : > { %p3815_p2 = pneg %p3814_p1 }
  0x2c   : > { %p3820_p4 = pnand %p3818_p3, %p3815_p2 }
  0x2e   : > { %3823 = shalt.err (!%p3820_p4)
}
  0x2f   : > { %s3824_s29 = scalar_lea.vmem %s4209_s27, 256  ;;  %p3832_p9 = scmp.lt.s32.totalorder %s4209_s27, %s4209_s27 }
  0x30   : > { %p3825_p7 = scmp.ne.s32.totalorder %s4209_s27, %s3824_s29  ;;  %p3833_p6 = scmp.lt.s32.totalorder %s3824_s29, %s3824_s29 }
  0x32   : > { %p3827_p8 = pnand %p3825_p7, %p4229_p0  ;;  %p3834_p13 = por %p3833_p6, %p3832_p9 }
  0x34   : > { %p3828_p11 = pneg %p3827_p8 }
  0x36   : > { %p3835_p1 = pnand %p3834_p13, %p3828_p11 }
  0x38   : > { %3838 = shalt.err (!%p3835_p1)
}
  0x39   : > { %s4062_s15 = smov 64   ;;  %s4063_s19 = smov 4  }
  0x3a   : > { %3585 = dma.hbm_to_vmem [thread:$0]  (!%p4213_p12), %s4812_s4, 256, %s4209_s27, [#allocation6], %s4062_s15, %s4062_s15, %s4063_s19  }
  0x3b   : > { %s3839_s29 = scalar_lea.hbm %s4775_s6, 256 }
  0x3c   : > { %p3840_p6 = scmp.ne.s32.totalorder %s4775_s6, %s3839_s29  ;;  %p3846_p3 = scmp.lt.u32.totalorder %s3839_s29, %s4775_s6 }
  0x3e   : > { %p3842_p9 = pnand %p3840_p6, %p4229_p0 }
  0x40   : > { %p3843_p2 = pneg %p3842_p9 }
  0x42   : > { %p3848_p4 = pnand %p3846_p3, %p3843_p2 }
  0x44   : > { %3851 = shalt.err (!%p3848_p4)
}
  0x45   : > { %s3852_s27 = scalar_lea.vmem %s4217_s20, 256  ;;  %p3860_p13 = scmp.lt.s32.totalorder %s4217_s20, %s4217_s20 }
  0x46   : > { %p3853_p7 = scmp.ne.s32.totalorder %s4217_s20, %s3852_s27  ;;  %p3861_p1 = scmp.lt.s32.totalorder %s3852_s27, %s3852_s27 }
  0x48   : > { %p3855_p8 = pnand %p3853_p7, %p4229_p0  ;;  %p3862_p6 = por %p3861_p1, %p3860_p13 }
  0x4a   : > { %p3856_p11 = pneg %p3855_p8 }
  0x4c   : > { %p3863_p9 = pnand %p3862_p6, %p3856_p11 }
  0x4e   : > { %3866 = shalt.err (!%p3863_p9)
}
  0x4f   : > { %3591 = dma.hbm_to_vmem [thread:$0]  (!%p4213_p12), %s4775_s6, 256, %s4217_s20, [#allocation9], %s4062_s15, %s4062_s15, %s4063_s19  }
  0x50   : > { %s3867_s24 = scalar_lea.hbm %s4772_s3, 256 }
  0x51   : > { %p3868_p2 = scmp.ne.s32.totalorder %s4772_s3, %s3867_s24  ;;  %p3874_p7 = scmp.lt.u32.totalorder %s3867_s24, %s4772_s3 }
  0x53   : > { %p3870_p3 = pnand %p3868_p2, %p4229_p0 }
  0x55   : > { %p3871_p4 = pneg %p3870_p3 }
  0x57   : > { %p3876_p8 = pnand %p3874_p7, %p3871_p4 }
  0x59   : > { %3879 = shalt.err (!%p3876_p8)
}
  0x5a   : > { %s3880_s27 = scalar_lea.vmem %s382_s22, 256  ;;  %p3888_p6 = scmp.lt.s32.totalorder %s382_s22, %s382_s22 }
  0x5b   : > { %p3881_p11 = scmp.ne.s32.totalorder %s382_s22, %s3880_s27  ;;  %p3889_p9 = scmp.lt.s32.totalorder %s3880_s27, %s3880_s27 }
  0x5d   : > { %p3883_p13 = pnand %p3881_p11, %p4229_p0  ;;  %p3890_p5 = por %p3889_p9, %p3888_p6 }
  0x5f   : > { %p3884_p1 = pneg %p3883_p13 }
  0x61   : > { %p3891_p10 = pnand %p3890_p5, %p3884_p1 }
  0x63   : > { %3894 = shalt.err (!%p3891_p10)
}
  0x64   : > { %3582 = dma.hbm_to_vmem [thread:$0]  (!%p4213_p12), %s4772_s3, 256, %s382_s22, [#allocation3], %s4062_s15, %s4062_s15, %s4063_s19  }
  0x65   : > { %s4064_s14 = smov [#allocation7]   ;;  %s4065_s23 = smov [#allocation10]  }
  0x66   : > { %s407_s30 = sshll.u32 %s4064_s14, 4  ;;  %s433_s24 = sshll.u32 %s4065_s23, 4  ;;  %s408_s30 = int_to_ptr.vmem [resolvable:$true] %s407_s30  ;;  %s434_s24 = int_to_ptr.vmem [resolvable:$true] %s433_s24 }
  0x67   : > { %s3895_s21 = scalar_lea.hbm %s4774_s5, 256 }
  0x68   : > { %p3896_p5 = scmp.ne.s32.totalorder %s4774_s5, %s3895_s21  ;;  %p3902_p3 = scmp.lt.u32.totalorder %s3895_s21, %s4774_s5 }
  0x6a   : > { %p3898_p10 = pnand %p3896_p5, %p4229_p0 }
  0x6c   : > { %p3899_p2 = pneg %p3898_p10 }
  0x6e   : > { %p3904_p4 = pnand %p3902_p3, %p3899_p2 }
  0x70   : > { %3907 = shalt.err (!%p3904_p4)
}
  0x71   : > { %s3908_s22 = scalar_lea.vmem %s408_s30, 256  ;;  %p3916_p13 = scmp.lt.s32.totalorder %s408_s30, %s408_s30 }
  0x72   : > { %p3909_p7 = scmp.ne.s32.totalorder %s408_s30, %s3908_s22  ;;  %p3917_p1 = scmp.lt.s32.totalorder %s3908_s22, %s3908_s22 }
  0x74   : > { %p3911_p8 = pnand %p3909_p7, %p4229_p0  ;;  %p3918_p6 = por %p3917_p1, %p3916_p13 }
  0x76   : > { %p3912_p11 = pneg %p3911_p8 }
  0x78   : > { %p3919_p9 = pnand %p3918_p6, %p3912_p11 }
  0x7a   : > { %3922 = shalt.err (!%p3919_p9)
}
  0x7b   : > { %3588 = dma.hbm_to_vmem [thread:$0]  (!%p4213_p12), %s4774_s5, 256, %s408_s30, [#allocation6], %s4062_s15, %s4062_s15, %s4063_s19  }
  0x7c   : > { %s3923_s26 = scalar_lea.hbm %s4776_s7, 256 }
  0x7d   : > { %p3924_p5 = scmp.ne.s32.totalorder %s4776_s7, %s3923_s26  ;;  %p3930_p3 = scmp.lt.u32.totalorder %s3923_s26, %s4776_s7 }
  0x7f   : > { %p3926_p10 = pnand %p3924_p5, %p4229_p0 }
  0x81   : > { %p3927_p2 = pneg %p3926_p10 }
  0x83   : > { %p3932_p4 = pnand %p3930_p3, %p3927_p2 }
  0x85   : > { %3935 = shalt.err (!%p3932_p4)
}
  0x86   : > { %s3936_s20 = scalar_lea.vmem %s434_s24, 256  ;;  %p3944_p13 = scmp.lt.s32.totalorder %s434_s24, %s434_s24 }
  0x87   : > { %p3937_p7 = scmp.ne.s32.totalorder %s434_s24, %s3936_s20  ;;  %p3945_p1 = scmp.lt.s32.totalorder %s3936_s20, %s3936_s20 }
  0x89   : > { %p3939_p8 = pnand %p3937_p7, %p4229_p0  ;;  %p3946_p6 = por %p3945_p1, %p3944_p13 }
  0x8b   : > { %p3940_p11 = pneg %p3939_p8 }
  0x8d   : > { %p3947_p9 = pnand %p3946_p6, %p3940_p11 }
  0x8f   : > { %3950 = shalt.err (!%p3947_p9)
}
  0x90   : > { %3594 = dma.hbm_to_vmem [thread:$0]  (!%p4213_p12), %s4776_s7, 256, %s434_s24, [#allocation9], %s4062_s15, %s4062_s15, %s4063_s19  }
  0x91   : > { %s4066_s4 = smov [#allocation11]   ;;  %s3951_s26 = scalar_lea.hbm %s4777_s8, 256 }
  0x92   : > { %s446_s13 = sshll.u32 %s4066_s4, 4  ;;  %p3952_p5 = scmp.ne.s32.totalorder %s4777_s8, %s3951_s26  ;;  %s447_s13 = int_to_ptr.vmem [resolvable:$true] %s446_s13 }
  0x93   : > { %p3958_p3 = scmp.lt.u32.totalorder %s3951_s26, %s4777_s8 }
  0x94   : > { %p3954_p10 = pnand %p3952_p5, %p4229_p0 }
  0x96   : > { %p3955_p2 = pneg %p3954_p10 }
  0x98   : > { %p3960_p4 = pnand %p3958_p3, %p3955_p2 }
  0x9a   : > { %3963 = shalt.err (!%p3960_p4)
}
  0x9b   : > { %s3964_s24 = scalar_lea.vmem %s447_s13, 256  ;;  %p3972_p13 = scmp.lt.s32.totalorder %s447_s13, %s447_s13 }
  0x9c   : > { %p3965_p7 = scmp.ne.s32.totalorder %s447_s13, %s3964_s24  ;;  %p3973_p1 = scmp.lt.s32.totalorder %s3964_s24, %s3964_s24 }
  0x9e   : > { %p3967_p8 = pnand %p3965_p7, %p4229_p0  ;;  %p3974_p6 = por %p3973_p1, %p3972_p13 }
  0xa0   : > { %p3968_p11 = pneg %p3967_p8 }
  0xa2   : > { %p3975_p9 = pnand %p3974_p6, %p3968_p11 }
  0xa4   : > { %3978 = shalt.err (!%p3975_p9)
}
  0xa5   : > { %3597 = dma.hbm_to_vmem [thread:$0]  (!%p4213_p12), %s4777_s8, 256, %s447_s13, [#allocation12], %s4062_s15, %s4062_s15, %s4063_s19  }
  0xa6   : > { %p4814_p5 = scmp.ne.s32.totalorder %s4810_s25, 0 }
  0xa7   : > { %p4815_p0 = scmp.eq.s32.totalorder (!%p4814_p5), %s4175_s17, 0 }
  0xa8   : > { %493 = sbr.rel (%p4814_p5) target bundleno = 9290 (0x244a), region = 76 }
  0xaf   : > { %4024 = dma.done.wait (%p4815_p0), [#allocation3], 256   ;;  %p4816_p10 = pmov %p4815_p0 }
  0xb0   : > { %p4817_p2 = pmov %p4815_p0 }
  0xb1   : > { %4026 = vsyncadd (%p4816_p10), [#allocation3], 4294967040 }
  0xb2   : > { %4028 = dma.done.wait (%p4817_p2), [#allocation6], 512   ;;  %p4818_p3 = pmov %p4815_p0 }
  0xb3   : > { %p4819_p4 = pmov %p4815_p0 }
  0xb4   : > { %4030 = vsyncadd (%p4818_p3), [#allocation6], 4294966784 }
  0xb5   : > { %4032 = dma.done.wait (%p4819_p4), [#allocation9], 512   ;;  %p4820_p12 = pmov %p4815_p0 }
  0xb6   : > { %p4821_p7 = pmov %p4815_p0 }
  0xb7   : > { %4034 = vsyncadd (%p4820_p12), [#allocation9], 4294966784 }
  0xb8   : > { %4036 = dma.done.wait (%p4821_p7), [#allocation12], 256   ;;  %p4822_p8 = pmov %p4815_p0 }
  0xb9   : > { %vm611_vm0 = vcmask 1040384   ;;  %v4067_v0 = vmov 0.0   ;;  %p564_p11 = scmp.lt.s32.totalorder %s4175_s17, 1  ;;  %vm612_vm1 = vcmask 1041408   ;;  %v4068_v1 = vmov 65535   ;;  %s4071_s18 = smov 96  }
  0xba   : > { %4038 = vsyncadd (%p4822_p8), [#allocation12], 4294967040  ;;  %3270 = vmatprep.subr.bf16.mxu0 %v4067_v0  ;;  %v613_v2 = vsel %vm611_vm0, 4294967295, %v4068_v1  ;;  %vm4069_vm2 = vmmov 0   ;;  %v4070_v3 = vmov 0   ;;  %vm607_vm3 = vcmask 23552  }
  0xbb   : > { %3272 = vmatprep.mubr.msk.bf16.mxu0 %vm4069_vm2, %v4067_v0  ;;  %3666 = vset.pattern.permute.xlu0 %v4070_v3  ;;  %s565_s16 = scalar_select %p564_p11, %s4175_s17, 1  ;;  %v614_v4 = vsel %vm612_vm1, %v613_v2, 0  ;;  %v606_v5 = vld [vmem:[%s4771_s2] sm:$0x3]  ;;  %v575_v14 = vlaneseq  ;;  %vm660_vm6 = vcmask 130048   ;;  %v4072_v35 = vmov 0.0|0.0  }
  0xbc   : > { %3667 = vset.pattern.permute.xlu1 %v4070_v3  ;;  %v616_v8 = vand.u32 %v614_v4, %v606_v5  ;;  %s4073_s21 = smov 32   ;;  %vm748_vm9 = vcmask 261120   ;;  %v4074_v60 = vmov 1.0   ;;  %s4075_s29 = smov 64   ;;  %vm2094_vm10 = vcmask 523264  }
  0xbd   : > { %s3164_s25 = sshll.u32 %s565_s16, 4  ;;  %s3165_s28 = sshll.u32 %s565_s16, 5  ;;  %v576_v15 = vand.u32 127, %v575_v14 }
  0xbe   : > { %s568_s22 = scalar_lea.vmem %s4769_s0, %s3164_s25  ;;  %s573_s14 = scalar_lea.vmem %s4770_s1, %s3165_s28  ;;  %3271 = vmatpush3.bf16.msra.mxu0 %v616_v8  ;;  %v835_v8 = vshrl.u32 %v575_v14, 7 }
  0xbf   : > { %v577_v6 = vld [vmem:[%s568_s22] sm:$0xff]  ;;  %v578_v7 = vld [vmem:[%s568_s22 + $0x8] sm:$0xff]  ;;  %v581_v10 = vld [vmem:[%s573_s14 + $0x10] sm:$0xff]  ;;  %3502 = vmatprep.subr.bf16.mxu0 %v4072_v35  ;;  %s4823_s23 = sld [smem:[#allocation20_spill]]  ;;  %s4824_s30 = sld [smem:[#allocation28_spill]] }
  0xc0   : > { %v579_v9 = vld [vmem:[%s573_s14] sm:$0xff]  ;;  %v580_v11 = vld [vmem:[%s573_s14 + $0x8] sm:$0xff]  ;;  %v605_v12 = vpack.c.bf16 %v578_v7, %v577_v6  ;;  %590 = vperm.xlu1 %3667, %v581_v10   ;;  %v582_v13 = vld [vmem:[%s573_s14 + $0x18] sm:$0xff]  ;;  %s4825_s25 = sld [smem:[#allocation25_spill]]  ;;  %s4826_s22 = sld [smem:[#allocation29_spill]] }
  0xc1   : > { %584 = vperm.xlu0 %3666, %v579_v9   ;;  %v3763_v6 = vld [vmem:[#allocation2] sm:$0xff]   ;;  %v3764_v7 = vld [vmem:[#allocation2 + $0x8] sm:$0xff]   ;;  %v4433_v9 = vsub.s32 0, %v835_v8  ;;  %s4076_s14 = smov [#allocation13]  }
  0xc2   : > { %3273 = vmatmul.mubr.msk.bf16.vlgmr.msra.gmra.mrb[0].mxu0 %vm607_vm3, %v605_v12 }
  0xc3   : > { %3309 = vmatprep.mubr.msk.f32.mxu0 %vm4069_vm2, %v4067_v0 }
  0xc4   : > { %593 = vperm.xlu1 %3667, %v582_v13  }
  0xc5   : > { %587 = vperm.xlu0 %3666, %v580_v11  }
  0xc6   : > { %p4827_p1 = scmp.ne.s32.totalorder %s4825_s25, 0 }
 0x13f   : > { %v591_v21 = vpop.permute.xlu1 %590 }
 0x140   : > { %v585_v16 = vpop.permute.xlu0 %584  ;;  %vm597_vm7 = vcmp.eq.s32.totalorder %v591_v21, %v576_v15 }
 0x141   : > { %vm595_vm4 = vcmp.eq.s32.totalorder %v585_v16, %v576_v15  ;;  %v601_v28 = vsel %vm597_vm7, 1.0, %v4067_v0 }
 0x142   : > { %v599_v17 = vsel %vm595_vm4, 1.0, %v4067_v0 }
 0x143   : > { %v594_v22 = vpop.permute.xlu1 %593 }
 0x144   : > { %v588_v18 = vpop.permute.xlu0 %587  ;;  %vm598_vm8 = vcmp.eq.s32.totalorder %v594_v22, %v576_v15 }
 0x145   : > { %vm596_vm5 = vcmp.eq.s32.totalorder %v588_v18, %v576_v15  ;;  %v602_v29 = vsel %vm598_vm8, 1.0, %v4067_v0 }
 0x146   : > { %v600_v19 = vsel %vm596_vm5, 1.0, %v4067_v0  ;;  %v4409_v30 = vpack.c.bf16 %v602_v29, %v601_v28 }
 0x147   : > { %v4401_v20 = vpack.c.bf16 %v600_v19, %v599_v17 }
 0x149   : > { %3278 = vmatprep.mubr.msk.bf16.mxu1 %vm660_vm6, %v4401_v20 }
 0x195   : > { %v652_v23 = vpop.f32.mrb[0].mxu0 }
 0x196   : > { %718 = vrot.lane.b32.xlu0 %v652_v23, %s4071_s18  ;;  %v3274_v24 = vpop.f32.mrb[1].mxu0 }
 0x197   : > { %v655_v25 = vpop.f32.mrb[2].mxu0 }
 0x198   : > { %720 = vrot.lane.b32.xlu1 %v655_v25, %s4071_s18  ;;  %v3275_v26 = vpop.f32.mrb[3].mxu0  ;;  %v659_v27 = vpack.c.bf16 %v655_v25, %v652_v23 }
 0x19a   : > { %3276 = vmatprep.subr.bf16.mxu1 %v659_v27 }
 0x19b   : > { %3277 = vmatpush3.bf16.msra.mxu1 %v659_v27 }
 0x19c   : > { %3496 = vmatprep.subr.bf16.mxu1 %v4072_v35 }
 0x19e   : > { %3279 = vmatmul.mubr.msk.bf16.vlgmr.msra.gmra.mrb[0].mxu1 %vm660_vm6, %v4409_v30 }
 0x19f   : > { %3290 = vmatprep.mubr.msk.f32.mxu1 %vm4069_vm2, %v4067_v0 }
 0x208   : > { %v719_v31 = vpop.permute.xlu0 %718 }
 0x20a   : > { %v721_v36 = vpop.permute.xlu1 %720 }
 0x271   : > { %v3280_v32 = vpop.f32.mrb[0].mxu1 }
 0x272   : > { %v4415_v33 = vadd.f32 %v3280_v32, %v719_v31  ;;  %v701_v34 = vpop.f32.mrb[1].mxu1 }
 0x273   : > { %v724_v37 = vadd.f32 %v719_v31, %v701_v34  ;;  %v3281_v38 = vpop.f32.mrb[2].mxu1 }
 0x274   : > { %v727_v39 = vadd.f32 %v3281_v38, %v721_v36  ;;  %v704_v40 = vpop.f32.mrb[3].mxu1  ;;  %v730_v42 = vmul.f32 %v4415_v33, %v4415_v33 }
 0x275   : > { %v725_v41 = vadd.f32 %v721_v36, %v704_v40  ;;  %v728_v44 = vmul.f32 %v724_v37, %v724_v37 }
 0x276   : > { %v731_v43 = vmul.f32 %v727_v39, %v727_v39 }
 0x277   : > { %v729_v45 = vmul.f32 %v725_v41, %v725_v41 }
 0x278   : > { %v3673_v46 = vpack.i.bf16 %v731_v43, %v730_v42 }
 0x279   : > { %v3668_v47 = vpack.i.bf16 %v729_v45, %v728_v44 }
 0x27a   : > { %3674 = vrot.lane.b32.xlu1 %v3673_v46, %s4073_s21 }
 0x27b   : > { %3669 = vrot.lane.b32.xlu0 %v3668_v47, %s4073_s21 }
 0x2ec   : > { %v3675_v48 = vpop.permute.xlu1 %3674 }
 0x2ed   : > { %v3670_v49 = vpop.permute.xlu0 %3669  ;;  %v3677_v50 = vunpack.i.h.bf16 %v3675_v48  ;;  %v3676_v51 = vunpack.i.l.bf16 %v3675_v48 }
 0x2ee   : > { %v3672_v52 = vunpack.i.h.bf16 %v3670_v49  ;;  %v3671_v53 = vunpack.i.l.bf16 %v3670_v49 }
 0x2ef   : > { %v752_v57 = vsel %vm748_vm9, %v727_v39, %v3677_v50  ;;  %v751_v58 = vsel %vm748_vm9, %v4415_v33, %v3676_v51 }
 0x2f0   : > { %v750_v54 = vsel %vm748_vm9, %v725_v41, %v3672_v52  ;;  %v749_v55 = vsel %vm748_vm9, %v724_v37, %v3671_v53  ;;  %v3500_v59 = vpack.c.bf16 %v752_v57, %v751_v58 }
 0x2f1   : > { %v3497_v56 = vpack.c.bf16 %v750_v54, %v749_v55 }
 0x2f3   : > { %3498 = vmatpush3.bf16.msra.mxu1 %v3497_v56 }
 0x2f4   : > { %3499 = vmatprep.subr.bf16.mxu1 %v4072_v35 }
 0x2f7   : > { %3501 = vmatpush3.bf16.msra.mxu1 %v3500_v59 }
 0x2f8   : > { %3293 = vmatprep.subr.bf16.mxu1 %v3763_v6 }
 0x2fa   : > { %3291 = vmatmul.mubr.msk.f32.vlgmr.msra.gmra.mrb[4].mxu1 %vm748_vm9, %v4074_v60 }
 0x2fb   : > { %3294 = vmatpush3.bf16.msra.mxu1 %v3763_v6 }
 0x2fc   : > { %3295 = vmatprep.subr.bf16.mxu1 %v3764_v7 }
 0x2ff   : > { %3296 = vmatpush3.bf16.msra.mxu1 %v3764_v7 }
 0x3cd   : > { %v822_v61 = vpop.f32.mrb[4].mxu1 }
 0x3ce   : > { %v826_v62 = vmul.f32 0.03125, %v822_v61  ;;  %v3292_v63 = vpop.f32.mrb[5].mxu1 }
 0x3d0   : > { %v827_v1 = vmul.f32 %v826_v62, %v826_v62  ;;  %v837_v12 = vrot.slane %v826_v62, %v4433_v9 }
 0x3d2   : > { %829 = vrot.lane.b32.xlu0 %v827_v1, %s4073_s21  ;;  %v838_v13 = vsub.f32 %v724_v37, %v837_v12  ;;  %v839_v15 = vsub.f32 %v725_v41, %v837_v12  ;;  %v840_v16 = vsub.f32 %v4415_v33, %v837_v12  ;;  %v841_v17 = vsub.f32 %v727_v39, %v837_v12 }
 0x444   : > { %v830_v2 = vpop.permute.xlu0 %829 }
 0x445   : > { %v832_v3 = vsub.f32 %v826_v62, %v830_v2 }
 0x447   : > { %v833_v4 = vmax.f32 %v832_v3, 0.0  ;;  %v3765_v3 = vld [vmem:[#allocation5] sm:$0xff]  }
 0x448   : > { %3312 = vmatprep.subr.bf16.mxu1 %v3765_v3 }
 0x449   : > { %v842_v5 = vadd.f32 1e-05, %v833_v4  ;;  %v3766_v4 = vld [vmem:[#allocation5 + $0x8] sm:$0xff]  }
 0x44b   : > { %3791 = vrsqrt.f32 %v842_v5 }
 0x455   : > { %v3792_v10 = vpop.eup %3791 }
 0x456   : > { %v847_v11 = vrot.slane %v3792_v10, %v4433_v9 }
 0x458   : > { %849 = vrot.lane.b32.xlu1 %v847_v11, %s4071_s18 }
 0x4ca   : > { %v850_v18 = vpop.permute.xlu1 %849 }
 0x4cb   : > { %v852_v19 = vmul.f32 %v850_v18, %v838_v13  ;;  %v853_v21 = vmul.f32 %v850_v18, %v839_v15  ;;  %v854_v14 = vmul.f32 %v850_v18, %v840_v16  ;;  %v855_v22 = vmul.f32 %v850_v18, %v841_v17 }
 0x4cd   : > { %v856_v23 = vmul.f32 0.01, %v852_v19  ;;  %v857_v24 = vmul.f32 0.01, %v853_v21  ;;  %v858_v25 = vmul.f32 0.01, %v854_v14 }
 0x4ce   : > { %v859_v26 = vmul.f32 0.01, %v855_v22 }
 0x4cf   : > { %v860_v27 = vmax.f32 %v852_v19, %v856_v23  ;;  %v861_v28 = vmax.f32 %v853_v21, %v857_v24  ;;  %v862_v29 = vmax.f32 %v854_v14, %v858_v25 }
 0x4d0   : > { %v863_v31 = vmax.f32 %v855_v22, %v859_v26 }
 0x4d1   : > { %v864_v32 = vpack.c.bf16 %v861_v28, %v860_v27 }
 0x4d2   : > { %v865_v34 = vpack.c.bf16 %v863_v31, %v862_v29 }
 0x4d3   : > { %3297 = vmatprep.mubr.msk.bf16.mxu1 %vm748_vm9, %v864_v32 }
 0x4d4   : > { %3298 = vmatmul.mubr.msk.bf16.vlgmr.msra.gmra.mrb[8].mxu1 %vm748_vm9, %v865_v34 }
 0x4d5   : > { %3313 = vmatpush3.bf16.msra.mxu1 %v3765_v3 }
 0x4d6   : > { %3314 = vmatprep.subr.bf16.mxu1 %v3766_v4 }
 0x4d9   : > { %3315 = vmatpush3.bf16.msra.mxu1 %v3766_v4 }
 0x4da   : > { %3331 = vmatprep.subr.bf16.mxu1 %v4067_v0 }
 0x5a7   : > { %v3299_v33 = vpop.f32.mrb[8].mxu1 }
 0x5a8   : > { %v922_v36 = vpop.f32.mrb[9].mxu1  ;;  %v939_v38 = vmul.f32 %v3299_v33, %v3299_v33 }
 0x5a9   : > { %v3300_v37 = vpop.f32.mrb[10].mxu1  ;;  %v937_v41 = vmul.f32 %v922_v36, %v922_v36 }
 0x5aa   : > { %v940_v39 = vmul.f32 %v3300_v37, %v3300_v37  ;;  %v925_v40 = vpop.f32.mrb[11].mxu1 }
 0x5ab   : > { %v938_v42 = vmul.f32 %v925_v40, %v925_v40 }
 0x5ac   : > { %v3683_v43 = vpack.i.bf16 %v940_v39, %v939_v38 }
 0x5ad   : > { %v3678_v44 = vpack.i.bf16 %v938_v42, %v937_v41 }
 0x5ae   : > { %3684 = vrot.lane.b32.xlu1 %v3683_v43, %s4073_s21 }
 0x5af   : > { %3679 = vrot.lane.b32.xlu0 %v3678_v44, %s4073_s21 }
 0x620   : > { %v3685_v45 = vpop.permute.xlu1 %3684 }
 0x621   : > { %v3687_v46 = vunpack.i.h.bf16 %v3685_v45  ;;  %v3686_v47 = vunpack.i.l.bf16 %v3685_v45  ;;  %v3680_v48 = vpop.permute.xlu0 %3679 }
 0x622   : > { %v3682_v49 = vunpack.i.h.bf16 %v3680_v48  ;;  %v3681_v50 = vunpack.i.l.bf16 %v3680_v48 }
 0x623   : > { %v960_v51 = vsel %vm748_vm9, %v3300_v37, %v3687_v46  ;;  %v959_v52 = vsel %vm748_vm9, %v3299_v33, %v3686_v47 }
 0x624   : > { %v3506_v53 = vpack.c.bf16 %v960_v51, %v959_v52  ;;  %v958_v54 = vsel %vm748_vm9, %v925_v40, %v3682_v49  ;;  %v957_v55 = vsel %vm748_vm9, %v922_v36, %v3681_v50 }
 0x625   : > { %v3503_v56 = vpack.c.bf16 %v958_v54, %v957_v55 }
 0x627   : > { %3504 = vmatpush3.bf16.msra.mxu0 %v3503_v56 }
 0x628   : > { %3505 = vmatprep.subr.bf16.mxu0 %v4072_v35 }
 0x62b   : > { %3507 = vmatpush3.bf16.msra.mxu0 %v3506_v53 }
 0x62c   : > { %3508 = vmatprep.subr.bf16.mxu0 %v4072_v35 }
 0x62e   : > { %3310 = vmatmul.mubr.msk.f32.vlgmr.msra.gmra.mrb[4].mxu0 %vm748_vm9, %v4074_v60 }
 0x62f   : > { %3328 = vmatprep.mubr.msk.f32.mxu0 %vm4069_vm2, %v4067_v0 }
 0x701   : > { %v1027_v57 = vpop.f32.mrb[4].mxu0 }
 0x702   : > { %v1031_v58 = vmul.f32 0.03125, %v1027_v57  ;;  %v3311_v59 = vpop.f32.mrb[5].mxu0 }
 0x704   : > { %v1032_v61 = vmul.f32 %v1031_v58, %v1031_v58  ;;  %v1042_v7 = vrot.slane %v1031_v58, %v4433_v9 }
 0x706   : > { %1034 = vrot.lane.b32.xlu0 %v1032_v61, %s4073_s21  ;;  %v1043_v8 = vsub.f32 %v922_v36, %v1042_v7  ;;  %v1044_v10 = vsub.f32 %v925_v40, %v1042_v7  ;;  %v1045_v11 = vsub.f32 %v3299_v33, %v1042_v7  ;;  %v1046_v12 = vsub.f32 %v3300_v37, %v1042_v7 }
 0x778   : > { %v1035_v62 = vpop.permute.xlu0 %1034 }
 0x779   : > { %v1037_v63 = vsub.f32 %v1031_v58, %v1035_v62  ;;  %v3767_v62 = vld [vmem:[#allocation7] sm:$0xff]  }
 0x77b   : > { %v1038_v1 = vmax.f32 %v1037_v63, 0.0  ;;  %v3768_v63 = vld [vmem:[#allocation7 + $0x8] sm:$0xff]  }
 0x77d   : > { %v1047_v2 = vadd.f32 1e-05, %v1038_v1 }
 0x77f   : > { %3793 = vrsqrt.f32 %v1047_v2 }
 0x789   : > { %v3794_v5 = vpop.eup %3793 }
 0x78a   : > { %v1052_v6 = vrot.slane %v3794_v5, %v4433_v9 }
 0x78c   : > { %1054 = vrot.lane.b32.xlu1 %v1052_v6, %s4071_s18 }
 0x7fe   : > { %v1055_v13 = vpop.permute.xlu1 %1054 }
 0x7ff   : > { %v1057_v15 = vmul.f32 %v1055_v13, %v1043_v8  ;;  %v1058_v16 = vmul.f32 %v1055_v13, %v1044_v10  ;;  %v1059_v17 = vmul.f32 %v1055_v13, %v1045_v11  ;;  %v1060_v18 = vmul.f32 %v1055_v13, %v1046_v12 }
 0x801   : > { %v1061_v19 = vmul.f32 0.01, %v1057_v15  ;;  %v1062_v21 = vmul.f32 0.01, %v1058_v16  ;;  %v1063_v14 = vmul.f32 0.01, %v1059_v17 }
 0x802   : > { %v1064_v22 = vmul.f32 0.01, %v1060_v18 }
 0x803   : > { %v1065_v23 = vmax.f32 %v1057_v15, %v1061_v19  ;;  %v1066_v24 = vmax.f32 %v1058_v16, %v1062_v21  ;;  %v1067_v25 = vmax.f32 %v1059_v17, %v1063_v14 }
 0x804   : > { %v1068_v26 = vmax.f32 %v1060_v18, %v1064_v22 }
 0x805   : > { %v1069_v27 = vpack.c.bf16 %v1066_v24, %v1065_v23 }
 0x806   : > { %v1070_v28 = vpack.c.bf16 %v1068_v26, %v1067_v25 }
 0x807   : > { %3316 = vmatprep.mubr.msk.bf16.mxu1 %vm748_vm9, %v1069_v27 }
 0x808   : > { %3317 = vmatmul.mubr.msk.bf16.vlgmr.msra.gmra.mrb[12].mxu1 %vm748_vm9, %v1070_v28 }
 0x809   : > { %3335 = vmatprep.mubr.msk.bf16.mxu1 %vm4069_vm2, %v4067_v0  ;;  %3332 = vmatpush3.bf16.msra.mxu1 %v3767_v62 }
 0x80a   : > { %3333 = vmatprep.subr.bf16.mxu1 %v4067_v0 }
 0x80d   : > { %3334 = vmatpush3.bf16.msra.mxu1 %v3768_v63 }
 0x80e   : > { %3514 = vmatprep.subr.bf16.mxu1 %v4072_v35 }
 0x8db   : > { %v3318_v29 = vpop.f32.mrb[12].mxu1 }
 0x8dc   : > { %v1127_v31 = vpop.f32.mrb[13].mxu1  ;;  %v1144_v34 = vmul.f32 %v3318_v29, %v3318_v29 }
 0x8dd   : > { %v3319_v32 = vpop.f32.mrb[14].mxu1  ;;  %v1142_v37 = vmul.f32 %v1127_v31, %v1127_v31 }
 0x8de   : > { %v1145_v33 = vmul.f32 %v3319_v32, %v3319_v32  ;;  %v1130_v36 = vpop.f32.mrb[15].mxu1 }
 0x8df   : > { %v1143_v38 = vmul.f32 %v1130_v36, %v1130_v36 }
 0x8e0   : > { %v3693_v39 = vpack.i.bf16 %v1145_v33, %v1144_v34 }
 0x8e1   : > { %v3688_v40 = vpack.i.bf16 %v1143_v38, %v1142_v37 }
 0x8e2   : > { %3694 = vrot.lane.b32.xlu1 %v3693_v39, %s4073_s21 }
 0x8e3   : > { %3689 = vrot.lane.b32.xlu0 %v3688_v40, %s4073_s21 }
 0x954   : > { %v3695_v41 = vpop.permute.xlu1 %3694 }
 0x955   : > { %v3697_v42 = vunpack.i.h.bf16 %v3695_v41  ;;  %v3696_v43 = vunpack.i.l.bf16 %v3695_v41  ;;  %v3690_v44 = vpop.permute.xlu0 %3689 }
 0x956   : > { %v3692_v45 = vunpack.i.h.bf16 %v3690_v44  ;;  %v3691_v46 = vunpack.i.l.bf16 %v3690_v44 }
 0x957   : > { %v1165_v47 = vsel %vm748_vm9, %v3319_v32, %v3697_v42  ;;  %v1164_v48 = vsel %vm748_vm9, %v3318_v29, %v3696_v43 }
 0x958   : > { %v3512_v49 = vpack.c.bf16 %v1165_v47, %v1164_v48  ;;  %v1163_v50 = vsel %vm748_vm9, %v1130_v36, %v3692_v45  ;;  %v1162_v51 = vsel %vm748_vm9, %v1127_v31, %v3691_v46 }
 0x959   : > { %v3509_v52 = vpack.c.bf16 %v1163_v50, %v1162_v51 }
 0x95b   : > { %3510 = vmatpush3.bf16.msra.mxu0 %v3509_v52 }
 0x95c   : > { %3511 = vmatprep.subr.bf16.mxu0 %v4072_v35 }
 0x95f   : > { %3513 = vmatpush3.bf16.msra.mxu0 %v3512_v49 }
 0x962   : > { %3329 = vmatmul.mubr.msk.f32.vlgmr.msra.gmra.mrb[6].mxu0 %vm748_vm9, %v4074_v60 }
 0x963   : > { %3341 = vmatprep.mubr.msk.bf16.mxu0 %vm660_vm6, %v4401_v20 }
 0xa35   : > { %v1232_v53 = vpop.f32.mrb[6].mxu0 }
 0xa36   : > { %v1236_v54 = vmul.f32 0.03125, %v1232_v53  ;;  %v3330_v55 = vpop.f32.mrb[7].mxu0 }
 0xa38   : > { %v1237_v56 = vmul.f32 %v1236_v54, %v1236_v54  ;;  %v1247_v3 = vrot.slane %v1236_v54, %v4433_v9 }
 0xa3a   : > { %1239 = vrot.lane.b32.xlu0 %v1237_v56, %s4073_s21  ;;  %v1248_v4 = vsub.f32 %v1127_v31, %v1247_v3  ;;  %v1249_v5 = vsub.f32 %v1130_v36, %v1247_v3  ;;  %v1250_v6 = vsub.f32 %v3318_v29, %v1247_v3  ;;  %v1251_v7 = vsub.f32 %v3319_v32, %v1247_v3 }
 0xaac   : > { %v1240_v57 = vpop.permute.xlu0 %1239 }
 0xaad   : > { %v1242_v58 = vsub.f32 %v1236_v54, %v1240_v57 }
 0xaaf   : > { %v1243_v59 = vmax.f32 %v1242_v58, 0.0 }
 0xab1   : > { %v1252_v61 = vadd.f32 1e-05, %v1243_v59 }
 0xab3   : > { %3795 = vrsqrt.f32 %v1252_v61 }
 0xabd   : > { %v3796_v1 = vpop.eup %3795 }
 0xabe   : > { %v1257_v2 = vrot.slane %v3796_v1, %v4433_v9 }
 0xac0   : > { %1259 = vrot.lane.b32.xlu1 %v1257_v2, %s4071_s18 }
 0xb32   : > { %v1260_v8 = vpop.permute.xlu1 %1259 }
 0xb33   : > { %v1262_v10 = vmul.f32 %v1260_v8, %v1248_v4  ;;  %v1263_v11 = vmul.f32 %v1260_v8, %v1249_v5  ;;  %v1264_v12 = vmul.f32 %v1260_v8, %v1250_v6  ;;  %v1265_v13 = vmul.f32 %v1260_v8, %v1251_v7 }
 0xb35   : > { %v1266_v15 = vmul.f32 0.01, %v1262_v10  ;;  %v1267_v16 = vmul.f32 0.01, %v1263_v11  ;;  %v1268_v17 = vmul.f32 0.01, %v1264_v12 }
 0xb36   : > { %v1269_v18 = vmul.f32 0.01, %v1265_v13 }
 0xb37   : > { %v1270_v19 = vmax.f32 %v1262_v10, %v1266_v15  ;;  %v1271_v21 = vmax.f32 %v1263_v11, %v1267_v16  ;;  %v1272_v14 = vmax.f32 %v1264_v12, %v1268_v17  ;;  %v3769_v12 = vld [vmem:[#allocation8] sm:$0xff]  }
 0xb38   : > { %v1273_v22 = vmax.f32 %v1265_v13, %v1269_v18  ;;  %v3770_v13 = vld [vmem:[#allocation8 + $0x8] sm:$0xff]  }
 0xb39   : > { %v1274_v23 = vsel %vm748_vm9, %v1270_v19, -inf  ;;  %v1275_v24 = vsel %vm748_vm9, %v1272_v14, -inf  ;;  %v1277_v25 = vsel %vm748_vm9, %v1271_v21, -inf }
 0xb3a   : > { %v1276_v26 = vmax.f32 %v1274_v23, %v1275_v24  ;;  %v1278_v27 = vsel %vm748_vm9, %v1273_v22, -inf }
 0xb3b   : > { %v1279_v28 = vmax.f32 %v1277_v25, %v1278_v27 }
 0xb3d   : > { %v1280_v29 = vpack.c.bf16 %v1279_v28, %v1276_v26 }
 0xb3f   : > { %3336 = vmatmul.mubr.msk.bf16.vlgmr.msra.gmra.mrb[16].mxu1 %vm748_vm9, %v1280_v29 }
 0xb40   : > { %3353 = vmatprep.mubr.msk.f32.mxu1 %vm4069_vm2, %v4067_v0 }
 0xc12   : > { %v1334_v31 = vpop.f32.mrb[16].mxu1 }
 0xc13   : > { %1393 = vrot.lane.b32.xlu0 %v1334_v31, %s4071_s18  ;;  %v3337_v32 = vpop.f32.mrb[17].mxu1 }
 0xc14   : > { %v1337_v34 = vpop.f32.mrb[18].mxu1 }
 0xc15   : > { %v1341_v33 = vpack.c.bf16 %v1337_v34, %v1334_v31  ;;  %1395 = vrot.lane.b32.xlu1 %v1337_v34, %s4071_s18  ;;  %v3338_v36 = vpop.f32.mrb[19].mxu1 }
 0xc17   : > { %3339 = vmatprep.subr.bf16.mxu0 %v1341_v33 }
 0xc18   : > { %3340 = vmatpush3.bf16.msra.mxu0 %v1341_v33 }
 0xc19   : > { %3356 = vmatprep.subr.bf16.mxu0 %v3769_v12 }
 0xc1b   : > { %3342 = vmatmul.mubr.msk.bf16.vlgmr.msra.gmra.mrb[8].mxu0 %vm660_vm6, %v4409_v30 }
 0xc1c   : > { %3357 = vmatpush3.bf16.msra.mxu0 %v3769_v12 }
 0xc1d   : > { %3358 = vmatprep.subr.bf16.mxu0 %v3770_v13 }
 0xc20   : > { %3359 = vmatpush3.bf16.msra.mxu0 %v3770_v13 }
 0xc85   : > { %v1394_v37 = vpop.permute.xlu0 %1393 }
 0xc87   : > { %v1396_v41 = vpop.permute.xlu1 %1395 }
 0xcee   : > { %v3343_v38 = vpop.f32.mrb[8].mxu0 }
 0xcef   : > { %v1401_v39 = vadd.f32 %v3343_v38, %v1394_v37  ;;  %v1376_v40 = vpop.f32.mrb[9].mxu0 }
 0xcf0   : > { %v1399_v42 = vadd.f32 %v1394_v37, %v1376_v40  ;;  %v3344_v43 = vpop.f32.mrb[10].mxu0 }
 0xcf1   : > { %v1402_v44 = vadd.f32 %v3344_v43, %v1396_v41  ;;  %v1379_v45 = vpop.f32.mrb[11].mxu0  ;;  %v1405_v47 = vmul.f32 %v1401_v39, %v1401_v39 }
 0xcf2   : > { %v1400_v46 = vadd.f32 %v1396_v41, %v1379_v45  ;;  %v1403_v49 = vmul.f32 %v1399_v42, %v1399_v42 }
 0xcf3   : > { %v1406_v48 = vmul.f32 %v1402_v44, %v1402_v44 }
 0xcf4   : > { %v1404_v50 = vmul.f32 %v1400_v46, %v1400_v46 }
 0xcf5   : > { %v3703_v51 = vpack.i.bf16 %v1406_v48, %v1405_v47 }
 0xcf6   : > { %v3698_v52 = vpack.i.bf16 %v1404_v50, %v1403_v49 }
 0xcf7   : > { %3704 = vrot.lane.b32.xlu1 %v3703_v51, %s4073_s21 }
 0xcf8   : > { %3699 = vrot.lane.b32.xlu0 %v3698_v52, %s4073_s21 }
 0xd69   : > { %v3705_v53 = vpop.permute.xlu1 %3704 }
 0xd6a   : > { %v3700_v54 = vpop.permute.xlu0 %3699  ;;  %v3707_v55 = vunpack.i.h.bf16 %v3705_v53  ;;  %v3706_v56 = vunpack.i.l.bf16 %v3705_v53 }
 0xd6b   : > { %v3702_v57 = vunpack.i.h.bf16 %v3700_v54  ;;  %v3701_v58 = vunpack.i.l.bf16 %v3700_v54 }
 0xd6c   : > { %v1426_v63 = vsel %vm748_vm9, %v1402_v44, %v3707_v55  ;;  %v1425_v1 = vsel %vm748_vm9, %v1401_v39, %v3706_v56 }
 0xd6d   : > { %v1424_v59 = vsel %vm748_vm9, %v1400_v46, %v3702_v57  ;;  %v1423_v61 = vsel %vm748_vm9, %v1399_v42, %v3701_v58  ;;  %v3518_v2 = vpack.c.bf16 %v1426_v63, %v1425_v1 }
 0xd6e   : > { %v3515_v62 = vpack.c.bf16 %v1424_v59, %v1423_v61 }
 0xd70   : > { %3516 = vmatpush3.bf16.msra.mxu1 %v3515_v62 }
 0xd71   : > { %3517 = vmatprep.subr.bf16.mxu1 %v4072_v35 }
 0xd74   : > { %3519 = vmatpush3.bf16.msra.mxu1 %v3518_v2 }
 0xd75   : > { %3520 = vmatprep.subr.bf16.mxu1 %v4072_v35 }
 0xd77   : > { %3354 = vmatmul.mubr.msk.f32.vlgmr.msra.gmra.mrb[6].mxu1 %vm748_vm9, %v4074_v60 }
 0xd78   : > { %3372 = vmatprep.mubr.msk.f32.mxu1 %vm4069_vm2, %v4067_v0 }
 0xe4a   : > { %v1493_v3 = vpop.f32.mrb[6].mxu1 }
 0xe4b   : > { %v1497_v4 = vmul.f32 0.03125, %v1493_v3  ;;  %v3355_v5 = vpop.f32.mrb[7].mxu1 }
 0xe4d   : > { %v1498_v6 = vmul.f32 %v1497_v4, %v1497_v4  ;;  %v1508_v17 = vrot.slane %v1497_v4, %v4433_v9 }
 0xe4f   : > { %1500 = vrot.lane.b32.xlu0 %v1498_v6, %s4073_s21  ;;  %v1509_v18 = vsub.f32 %v1399_v42, %v1508_v17  ;;  %v1510_v19 = vsub.f32 %v1400_v46, %v1508_v17  ;;  %v1511_v21 = vsub.f32 %v1401_v39, %v1508_v17  ;;  %v1512_v14 = vsub.f32 %v1402_v44, %v1508_v17 }
 0xec1   : > { %v1501_v7 = vpop.permute.xlu0 %1500 }
 0xec2   : > { %v1503_v8 = vsub.f32 %v1497_v4, %v1501_v7  ;;  %v3771_v7 = vld [vmem:[#allocation10] sm:$0xff]  }
 0xec3   : > { %3375 = vmatprep.subr.bf16.mxu0 %v3771_v7 }
 0xec4   : > { %v1504_v10 = vmax.f32 %v1503_v8, 0.0  ;;  %v3772_v8 = vld [vmem:[#allocation10 + $0x8] sm:$0xff]  }
 0xec6   : > { %v1513_v11 = vadd.f32 1e-05, %v1504_v10 }
 0xec8   : > { %3797 = vrsqrt.f32 %v1513_v11 }
 0xed2   : > { %v3798_v15 = vpop.eup %3797 }
 0xed3   : > { %v1518_v16 = vrot.slane %v3798_v15, %v4433_v9 }
 0xed5   : > { %1520 = vrot.lane.b32.xlu1 %v1518_v16, %s4071_s18 }
 0xf47   : > { %v1521_v22 = vpop.permute.xlu1 %1520 }
 0xf48   : > { %v1523_v23 = vmul.f32 %v1521_v22, %v1509_v18  ;;  %v1524_v24 = vmul.f32 %v1521_v22, %v1510_v19  ;;  %v1525_v25 = vmul.f32 %v1521_v22, %v1511_v21  ;;  %v1526_v26 = vmul.f32 %v1521_v22, %v1512_v14 }
 0xf4a   : > { %v1527_v27 = vmul.f32 0.01, %v1523_v23  ;;  %v1528_v28 = vmul.f32 0.01, %v1524_v24  ;;  %v1529_v29 = vmul.f32 0.01, %v1525_v25 }
 0xf4b   : > { %v1530_v31 = vmul.f32 0.01, %v1526_v26 }
 0xf4c   : > { %v1531_v32 = vmax.f32 %v1523_v23, %v1527_v27  ;;  %v1532_v34 = vmax.f32 %v1524_v24, %v1528_v28  ;;  %v1533_v33 = vmax.f32 %v1525_v25, %v1529_v29 }
 0xf4d   : > { %v1534_v36 = vmax.f32 %v1526_v26, %v1530_v31 }
 0xf4e   : > { %v1535_v37 = vpack.c.bf16 %v1532_v34, %v1531_v32 }
 0xf4f   : > { %v1536_v38 = vpack.c.bf16 %v1534_v36, %v1533_v33 }
 0xf50   : > { %3360 = vmatprep.mubr.msk.bf16.mxu0 %vm748_vm9, %v1535_v37 }
 0xf51   : > { %3361 = vmatmul.mubr.msk.bf16.vlgmr.msra.gmra.mrb[12].mxu0 %vm748_vm9, %v1536_v38 }
 0xf52   : > { %3376 = vmatpush3.bf16.msra.mxu0 %v3771_v7 }
 0xf53   : > { %3377 = vmatprep.subr.bf16.mxu0 %v3772_v8 }
 0xf56   : > { %3378 = vmatpush3.bf16.msra.mxu0 %v3772_v8 }
 0xf57   : > { %3394 = vmatprep.subr.bf16.mxu0 %v4067_v0 }
0x1024   : > { %v3362_v39 = vpop.f32.mrb[12].mxu0 }
0x1025   : > { %v1593_v40 = vpop.f32.mrb[13].mxu0  ;;  %v1610_v42 = vmul.f32 %v3362_v39, %v3362_v39 }
0x1026   : > { %v3363_v41 = vpop.f32.mrb[14].mxu0  ;;  %v1608_v45 = vmul.f32 %v1593_v40, %v1593_v40 }
0x1027   : > { %v1611_v43 = vmul.f32 %v3363_v41, %v3363_v41  ;;  %v1596_v44 = vpop.f32.mrb[15].mxu0 }
0x1028   : > { %v1609_v46 = vmul.f32 %v1596_v44, %v1596_v44 }
0x1029   : > { %v3713_v47 = vpack.i.bf16 %v1611_v43, %v1610_v42 }
0x102a   : > { %v3708_v48 = vpack.i.bf16 %v1609_v46, %v1608_v45 }
0x102b   : > { %3714 = vrot.lane.b32.xlu1 %v3713_v47, %s4073_s21 }
0x102c   : > { %3709 = vrot.lane.b32.xlu0 %v3708_v48, %s4073_s21 }
0x109d   : > { %v3715_v49 = vpop.permute.xlu1 %3714 }
0x109e   : > { %v3717_v50 = vunpack.i.h.bf16 %v3715_v49  ;;  %v3716_v51 = vunpack.i.l.bf16 %v3715_v49  ;;  %v3710_v52 = vpop.permute.xlu0 %3709 }
0x109f   : > { %v3712_v53 = vunpack.i.h.bf16 %v3710_v52  ;;  %v3711_v54 = vunpack.i.l.bf16 %v3710_v52 }
0x10a0   : > { %v1631_v55 = vsel %vm748_vm9, %v3363_v41, %v3717_v50  ;;  %v1630_v56 = vsel %vm748_vm9, %v3362_v39, %v3716_v51 }
0x10a1   : > { %v3524_v57 = vpack.c.bf16 %v1631_v55, %v1630_v56  ;;  %v1629_v58 = vsel %vm748_vm9, %v1596_v44, %v3712_v53  ;;  %v1628_v59 = vsel %vm748_vm9, %v1593_v40, %v3711_v54 }
0x10a2   : > { %v3521_v61 = vpack.c.bf16 %v1629_v58, %v1628_v59 }
0x10a4   : > { %3522 = vmatpush3.bf16.msra.mxu1 %v3521_v61 }
0x10a5   : > { %3523 = vmatprep.subr.bf16.mxu1 %v4072_v35 }
0x10a8   : > { %3525 = vmatpush3.bf16.msra.mxu1 %v3524_v57 }
0x10a9   : > { %3526 = vmatprep.subr.bf16.mxu1 %v4072_v35 }
0x10ab   : > { %3373 = vmatmul.mubr.msk.f32.vlgmr.msra.gmra.mrb[20].mxu1 %vm748_vm9, %v4074_v60 }
0x10ac   : > { %3391 = vmatprep.mubr.msk.f32.mxu1 %vm4069_vm2, %v4067_v0 }
0x117e   : > { %v1698_v62 = vpop.f32.mrb[20].mxu1 }
0x117f   : > { %v1702_v63 = vmul.f32 0.03125, %v1698_v62  ;;  %v3374_v1 = vpop.f32.mrb[21].mxu1 }
0x1181   : > { %v1703_v2 = vmul.f32 %v1702_v63, %v1702_v63  ;;  %v1713_v12 = vrot.slane %v1702_v63, %v4433_v9 }
0x1183   : > { %1705 = vrot.lane.b32.xlu0 %v1703_v2, %s4073_s21  ;;  %v1714_v13 = vsub.f32 %v1593_v40, %v1713_v12  ;;  %v1715_v15 = vsub.f32 %v1596_v44, %v1713_v12  ;;  %v1716_v16 = vsub.f32 %v3362_v39, %v1713_v12  ;;  %v1717_v17 = vsub.f32 %v3363_v41, %v1713_v12 }
0x11f5   : > { %v1706_v3 = vpop.permute.xlu0 %1705 }
0x11f6   : > { %v1708_v4 = vsub.f32 %v1702_v63, %v1706_v3  ;;  %v3773_v3 = vld [vmem:[#allocation11] sm:$0xff]  }
0x11f8   : > { %v1709_v5 = vmax.f32 %v1708_v4, 0.0  ;;  %v3774_v4 = vld [vmem:[#allocation11 + $0x8] sm:$0xff]  }
0x11fa   : > { %v1718_v6 = vadd.f32 1e-05, %v1709_v5 }
0x11fc   : > { %3799 = vrsqrt.f32 %v1718_v6 }
0x1206   : > { %v3800_v10 = vpop.eup %3799 }
0x1207   : > { %v1723_v11 = vrot.slane %v3800_v10, %v4433_v9 }
0x1209   : > { %1725 = vrot.lane.b32.xlu1 %v1723_v11, %s4071_s18 }
0x127b   : > { %v1726_v18 = vpop.permute.xlu1 %1725 }
0x127c   : > { %v1728_v19 = vmul.f32 %v1726_v18, %v1714_v13  ;;  %v1729_v21 = vmul.f32 %v1726_v18, %v1715_v15  ;;  %v1730_v14 = vmul.f32 %v1726_v18, %v1716_v16  ;;  %v1731_v22 = vmul.f32 %v1726_v18, %v1717_v17 }
0x127e   : > { %v1732_v23 = vmul.f32 0.01, %v1728_v19  ;;  %v1733_v24 = vmul.f32 0.01, %v1729_v21  ;;  %v1734_v25 = vmul.f32 0.01, %v1730_v14 }
0x127f   : > { %v1735_v26 = vmul.f32 0.01, %v1731_v22 }
0x1280   : > { %v1736_v27 = vmax.f32 %v1728_v19, %v1732_v23  ;;  %v1737_v28 = vmax.f32 %v1729_v21, %v1733_v24  ;;  %v1738_v29 = vmax.f32 %v1730_v14, %v1734_v25 }
0x1281   : > { %v1739_v31 = vmax.f32 %v1731_v22, %v1735_v26 }
0x1282   : > { %v1740_v32 = vpack.c.bf16 %v1737_v28, %v1736_v27 }
0x1283   : > { %v1741_v34 = vpack.c.bf16 %v1739_v31, %v1738_v29 }
0x1284   : > { %3379 = vmatprep.mubr.msk.bf16.mxu0 %vm748_vm9, %v1740_v32 }
0x1285   : > { %3380 = vmatmul.mubr.msk.bf16.vlgmr.msra.gmra.mrb[16].mxu0 %vm748_vm9, %v1741_v34 }
0x1286   : > { %3398 = vmatprep.mubr.msk.bf16.mxu0 %vm4069_vm2, %v4067_v0  ;;  %3395 = vmatpush3.bf16.msra.mxu0 %v3773_v3 }
0x1287   : > { %3396 = vmatprep.subr.bf16.mxu0 %v4067_v0 }
0x128a   : > { %3397 = vmatpush3.bf16.msra.mxu0 %v3774_v4 }
0x128b   : > { %3532 = vmatprep.subr.bf16.mxu0 %v4072_v35 }
0x1358   : > { %v3381_v33 = vpop.f32.mrb[16].mxu0 }
0x1359   : > { %v1798_v36 = vpop.f32.mrb[17].mxu0  ;;  %v1815_v38 = vmul.f32 %v3381_v33, %v3381_v33 }
0x135a   : > { %v3382_v37 = vpop.f32.mrb[18].mxu0  ;;  %v1813_v41 = vmul.f32 %v1798_v36, %v1798_v36 }
0x135b   : > { %v1816_v39 = vmul.f32 %v3382_v37, %v3382_v37  ;;  %v1801_v40 = vpop.f32.mrb[19].mxu0 }
0x135c   : > { %v1814_v42 = vmul.f32 %v1801_v40, %v1801_v40 }
0x135d   : > { %v3723_v43 = vpack.i.bf16 %v1816_v39, %v1815_v38 }
0x135e   : > { %v3718_v44 = vpack.i.bf16 %v1814_v42, %v1813_v41 }
0x135f   : > { %3724 = vrot.lane.b32.xlu1 %v3723_v43, %s4073_s21 }
0x1360   : > { %3719 = vrot.lane.b32.xlu0 %v3718_v44, %s4073_s21 }
0x13d1   : > { %v3725_v45 = vpop.permute.xlu1 %3724 }
0x13d2   : > { %v3727_v46 = vunpack.i.h.bf16 %v3725_v45  ;;  %v3726_v47 = vunpack.i.l.bf16 %v3725_v45  ;;  %v3720_v48 = vpop.permute.xlu0 %3719 }
0x13d3   : > { %v3722_v49 = vunpack.i.h.bf16 %v3720_v48  ;;  %v3721_v50 = vunpack.i.l.bf16 %v3720_v48 }
0x13d4   : > { %v1836_v51 = vsel %vm748_vm9, %v3382_v37, %v3727_v46  ;;  %v1835_v52 = vsel %vm748_vm9, %v3381_v33, %v3726_v47 }
0x13d5   : > { %v3530_v53 = vpack.c.bf16 %v1836_v51, %v1835_v52  ;;  %v1834_v54 = vsel %vm748_vm9, %v1801_v40, %v3722_v49  ;;  %v1833_v55 = vsel %vm748_vm9, %v1798_v36, %v3721_v50 }
0x13d6   : > { %v3527_v56 = vpack.c.bf16 %v1834_v54, %v1833_v55 }
0x13d8   : > { %3528 = vmatpush3.bf16.msra.mxu1 %v3527_v56 }
0x13d9   : > { %3529 = vmatprep.subr.bf16.mxu1 %v4072_v35 }
0x13dc   : > { %3531 = vmatpush3.bf16.msra.mxu1 %v3530_v53 }
0x13df   : > { %3392 = vmatmul.mubr.msk.f32.vlgmr.msra.gmra.mrb[22].mxu1 %vm748_vm9, %v4074_v60 }
0x13e0   : > { %3404 = vmatprep.mubr.msk.bf16.mxu1 %vm660_vm6, %v4401_v20 }
0x14b2   : > { %v1903_v57 = vpop.f32.mrb[22].mxu1 }
0x14b3   : > { %v1907_v58 = vmul.f32 0.03125, %v1903_v57  ;;  %v3393_v59 = vpop.f32.mrb[23].mxu1 }
0x14b5   : > { %v1908_v61 = vmul.f32 %v1907_v58, %v1907_v58  ;;  %v1918_v6 = vrot.slane %v1907_v58, %v4433_v9 }
0x14b7   : > { %1910 = vrot.lane.b32.xlu0 %v1908_v61, %s4073_s21  ;;  %v1919_v7 = vsub.f32 %v1798_v36, %v1918_v6  ;;  %v1920_v8 = vsub.f32 %v1801_v40, %v1918_v6  ;;  %v1921_v10 = vsub.f32 %v3381_v33, %v1918_v6  ;;  %v1922_v11 = vsub.f32 %v3382_v37, %v1918_v6  ;;  %s561_s21 = sand.u32 1, %s4823_s23   ;;  %s3983_s23 = sshll.u32 %s4076_s14, 4  ;;  %s3984_s23 = int_to_ptr.vmem [resolvable:$false] %s3983_s23 }
0x14b8   : > { %s3092_s27 = sshll.u32 %s561_s21, 4  ;;  %s3985_s26 = scalar_lea.vmem %s3984_s23, 512 }
0x14b9   : > { %s563_s16 = scalar_lea.vmem [#allocation13], %s3092_s27 }
0x14ba   : > { %s2942_s28 = sshll.u32 %s563_s16, 4  ;;  %s4719_s28 = int_to_ptr.vmem [resolvable:$true] %s2942_s28 }
0x14bb   : > { %s3979_s13 = scalar_lea.vmem %s4719_s28, 256  ;;  %p3986_p5 = scmp.lt.s32.totalorder %s4719_s28, %s3984_s23 }
0x14bc   : > { %p3980_p13 = scmp.ne.s32.totalorder %s4719_s28, %s3979_s13  ;;  %p3987_p0 = scmp.lt.s32.totalorder %s3985_s26, %s3979_s13 }
0x14be   : > { %p3981_p6 = pnand %p3980_p13, %p4827_p1  ;;  %p3988_p10 = por %p3987_p0, %p3986_p5 }
0x14c0   : > { %p3982_p9 = pneg %p3981_p6 }
0x14c2   : > { %p3989_p2 = pnand %p3988_p10, %p3982_p9 }
0x1529   : > { %v1911_v62 = vpop.permute.xlu0 %1910 }
0x152a   : > { %v1913_v63 = vsub.f32 %v1907_v58, %v1911_v62 }
0x152c   : > { %v1914_v1 = vmax.f32 %v1913_v63, 0.0 }
0x152e   : > { %v1923_v2 = vadd.f32 1e-05, %v1914_v1 }
0x1530   : > { %3801 = vrsqrt.f32 %v1923_v2 }
0x153a   : > { %v3802_v5 = vpop.eup %3801 }
0x153b   : > { %v1928_v20 = vrot.slane %v3802_v5, %v4433_v9 }
0x153d   : > { %1930 = vrot.lane.b32.xlu1 %v1928_v20, %s4071_s18 }
0x15af   : > { %v1931_v12 = vpop.permute.xlu1 %1930 }
0x15b0   : > { %v1933_v13 = vmul.f32 %v1931_v12, %v1919_v7  ;;  %v1934_v15 = vmul.f32 %v1931_v12, %v1920_v8  ;;  %v1935_v16 = vmul.f32 %v1931_v12, %v1921_v10  ;;  %v1936_v17 = vmul.f32 %v1931_v12, %v1922_v11  ;;  %v3775_v8 = vld [vmem:[%s4778_s9] sm:$0xff]   ;;  %v3776_v10 = vld [vmem:[%s4778_s9 + $0x8] sm:$0xff]  }
0x15b2   : > { %v1937_v18 = vmul.f32 0.01, %v1933_v13  ;;  %v1938_v19 = vmul.f32 0.01, %v1934_v15  ;;  %v1939_v21 = vmul.f32 0.01, %v1935_v16 }
0x15b3   : > { %v1940_v14 = vmul.f32 0.01, %v1936_v17 }
0x15b4   : > { %v1941_v22 = vmax.f32 %v1933_v13, %v1937_v18  ;;  %v1942_v23 = vmax.f32 %v1934_v15, %v1938_v19  ;;  %v1943_v24 = vmax.f32 %v1935_v16, %v1939_v21  ;;  %v3777_v16 = vld [vmem:[%s4778_s9 + $0x10] sm:$0xff]  }
0x15b5   : > { %v1944_v25 = vmax.f32 %v1936_v17, %v1940_v14  ;;  %v3778_v17 = vld [vmem:[%s4778_s9 + $0x18] sm:$0xff]  }
0x15b6   : > { %v1945_v26 = vsel %vm748_vm9, %v1941_v22, -inf  ;;  %v1946_v27 = vsel %vm748_vm9, %v1943_v24, -inf  ;;  %v1948_v28 = vsel %vm748_vm9, %v1942_v23, -inf }
0x15b7   : > { %v1947_v29 = vmax.f32 %v1945_v26, %v1946_v27  ;;  %v1949_v31 = vsel %vm748_vm9, %v1944_v25, -inf }
0x15b8   : > { %v1950_v32 = vmax.f32 %v1948_v28, %v1949_v31 }
0x15ba   : > { %v1951_v34 = vpack.c.bf16 %v1950_v32, %v1947_v29 }
0x15bc   : > { %3399 = vmatmul.mubr.msk.bf16.vlgmr.msra.gmra.mrb[20].mxu0 %vm748_vm9, %v1951_v34 }
0x15bd   : > { %3416 = vmatprep.mubr.msk.f32.mxu0 %vm4069_vm2, %v4067_v0 }
0x168f   : > { %v2005_v33 = vpop.f32.mrb[20].mxu0 }
0x1690   : > { %2064 = vrot.lane.b32.xlu0 %v2005_v33, %s4075_s29  ;;  %v3400_v36 = vpop.f32.mrb[21].mxu0 }
0x1691   : > { %v2008_v37 = vpop.f32.mrb[22].mxu0 }
0x1692   : > { %v2012_v38 = vpack.c.bf16 %v2008_v37, %v2005_v33  ;;  %2066 = vrot.lane.b32.xlu1 %v2008_v37, %s4075_s29  ;;  %v3401_v39 = vpop.f32.mrb[23].mxu0 }
0x1694   : > { %3402 = vmatprep.subr.bf16.mxu1 %v2012_v38 }
0x1695   : > { %3403 = vmatpush3.bf16.msra.mxu1 %v2012_v38 }
0x1696   : > { %3419 = vmatprep.subr.bf16.mxu1 %v3775_v8 }
0x1698   : > { %3405 = vmatmul.mubr.msk.bf16.vlgmr.msra.gmra.mrb[24].mxu1 %vm660_vm6, %v4409_v30 }
0x1699   : > { %3420 = vmatpush3.bf16.msra.mxu1 %v3775_v8 }
0x169a   : > { %3421 = vmatprep.subr.bf16.mxu1 %v3776_v10 }
0x169d   : > { %3422 = vmatpush3.bf16.msra.mxu1 %v3776_v10 }
0x169e   : > { %3423 = vmatprep.subr.bf16.mxu1 %v3777_v16 }
0x16a1   : > { %3424 = vmatpush3.bf16.msra.mxu1 %v3777_v16 }
0x16a2   : > { %3425 = vmatprep.subr.bf16.mxu1 %v3778_v17 }
0x16a5   : > { %3426 = vmatpush3.bf16.msra.mxu1 %v3778_v17 }
0x16a6   : > { %3544 = vmatprep.subr.bf16.mxu1 %v4072_v35 }
0x1702   : > { %v2065_v40 = vpop.permute.xlu0 %2064 }
0x1704   : > { %v2067_v44 = vpop.permute.xlu1 %2066 }
0x176b   : > { %v3406_v41 = vpop.f32.mrb[24].mxu1 }
0x176c   : > { %v4557_v42 = vadd.f32 %v3406_v41, %v2065_v40  ;;  %v2047_v43 = vpop.f32.mrb[25].mxu1 }
0x176d   : > { %v4559_v45 = vadd.f32 %v2065_v40, %v2047_v43  ;;  %v3407_v46 = vpop.f32.mrb[26].mxu1 }
0x176e   : > { %v4561_v47 = vadd.f32 %v3407_v46, %v2067_v44  ;;  %v2050_v48 = vpop.f32.mrb[27].mxu1  ;;  %v2076_v50 = vmul.f32 %v4557_v42, %v4557_v42 }
0x176f   : > { %v2071_v49 = vadd.f32 %v2067_v44, %v2050_v48  ;;  %v2074_v30 = vmul.f32 %v4559_v45, %v4559_v45 }
0x1770   : > { %v2077_v51 = vmul.f32 %v4561_v47, %v4561_v47 }
0x1771   : > { %v2075_v52 = vmul.f32 %v2071_v49, %v2071_v49 }
0x1772   : > { %v3733_v53 = vpack.i.bf16 %v2077_v51, %v2076_v50 }
0x1773   : > { %v3728_v54 = vpack.i.bf16 %v2075_v52, %v2074_v30 }
0x1774   : > { %3734 = vrot.lane.b32.xlu1 %v3733_v53, %s4075_s29 }
0x1775   : > { %3729 = vrot.lane.b32.xlu0 %v3728_v54, %s4075_s29 }
0x17e6   : > { %v3735_v55 = vpop.permute.xlu1 %3734 }
0x17e7   : > { %v3730_v56 = vpop.permute.xlu0 %3729  ;;  %v3737_v57 = vunpack.i.h.bf16 %v3735_v55  ;;  %v3736_v58 = vunpack.i.l.bf16 %v3735_v55 }
0x17e8   : > { %v3732_v59 = vunpack.i.h.bf16 %v3730_v56  ;;  %v3731_v61 = vunpack.i.l.bf16 %v3730_v56 }
0x17e9   : > { %v2098_v2 = vsel %vm2094_vm10, %v4561_v47, %v3737_v57  ;;  %v2097_v3 = vsel %vm2094_vm10, %v4557_v42, %v3736_v58 }
0x17ea   : > { %v2096_v62 = vsel %vm2094_vm10, %v2071_v49, %v3732_v59  ;;  %v2095_v63 = vsel %vm2094_vm10, %v4559_v45, %v3731_v61  ;;  %v3536_v4 = vpack.c.bf16 %v2098_v2, %v2097_v3 }
0x17eb   : > { %v3533_v1 = vpack.c.bf16 %v2096_v62, %v2095_v63 }
0x17ed   : > { %3534 = vmatpush3.bf16.msra.mxu0 %v3533_v1 }
0x17ee   : > { %3535 = vmatprep.subr.bf16.mxu0 %v4072_v35 }
0x17f1   : > { %3537 = vmatpush3.bf16.msra.mxu0 %v3536_v4 }
0x17f2   : > { %3538 = vmatprep.subr.bf16.mxu0 %v4072_v35 }
0x17f4   : > { %3417 = vmatmul.mubr.msk.f32.vlgmr.msra.gmra.mrb[24].mxu0 %vm748_vm9, %v4074_v60 }
0x17f5   : > { %3439 = vmatprep.mubr.msk.f32.mxu0 %vm4069_vm2, %v4067_v0 }
0x18c7   : > { %v2165_v5 = vpop.f32.mrb[24].mxu0 }
0x18c8   : > { %v2169_v20 = vmul.f32 0.03125, %v2165_v5  ;;  %v3418_v6 = vpop.f32.mrb[25].mxu0  ;;  %v3779_v5 = vld [vmem:[%s4779_s10] sm:$0xff]  }
0x18ca   : > { %v2170_v7 = vmul.f32 %v2169_v20, %v2169_v20  ;;  %v2180_v21 = vrot.slane %v2169_v20, %v4433_v9 }
0x18cc   : > { %2172 = vrot.lane.b32.xlu0 %v2170_v7, %s4075_s29  ;;  %v2181_v14 = vsub.f32 %v4559_v45, %v2180_v21  ;;  %v2182_v22 = vsub.f32 %v2071_v49, %v2180_v21  ;;  %v2183_v23 = vsub.f32 %v4557_v42, %v2180_v21  ;;  %v2184_v24 = vsub.f32 %v4561_v47, %v2180_v21 }
0x193e   : > { %v2173_v11 = vpop.permute.xlu0 %2172 }
0x193f   : > { %v2175_v12 = vsub.f32 %v2169_v20, %v2173_v11  ;;  %v3780_v20 = vld [vmem:[%s4779_s10 + $0x8] sm:$0xff]   ;;  %v3781_v11 = vld [vmem:[%s4779_s10 + $0x10] sm:$0xff]  }
0x1941   : > { %v2176_v13 = vmax.f32 %v2175_v12, 0.0  ;;  %v3782_v12 = vld [vmem:[%s4779_s10 + $0x18] sm:$0xff]  }
0x1943   : > { %v2185_v15 = vadd.f32 1e-05, %v2176_v13 }
0x1945   : > { %3803 = vrsqrt.f32 %v2185_v15 }
0x194f   : > { %v3804_v18 = vpop.eup %3803 }
0x1950   : > { %v2190_v19 = vrot.slane %v3804_v18, %v4433_v9 }
0x1952   : > { %2192 = vrot.lane.b32.xlu1 %v2190_v19, %s4075_s29 }
0x19c4   : > { %v2193_v25 = vpop.permute.xlu1 %2192 }
0x19c5   : > { %v2195_v26 = vmul.f32 %v2193_v25, %v2181_v14  ;;  %v2196_v27 = vmul.f32 %v2193_v25, %v2182_v22  ;;  %v2197_v28 = vmul.f32 %v2193_v25, %v2183_v23  ;;  %v2198_v29 = vmul.f32 %v2193_v25, %v2184_v24 }
0x19c7   : > { %v2199_v31 = vmul.f32 0.01, %v2195_v26  ;;  %v2200_v32 = vmul.f32 0.01, %v2196_v27  ;;  %v2201_v34 = vmul.f32 0.01, %v2197_v28 }
0x19c8   : > { %v2202_v33 = vmul.f32 0.01, %v2198_v29 }
0x19c9   : > { %v2203_v36 = vmax.f32 %v2195_v26, %v2199_v31  ;;  %v2204_v37 = vmax.f32 %v2196_v27, %v2200_v32  ;;  %v2205_v38 = vmax.f32 %v2197_v28, %v2201_v34 }
0x19ca   : > { %v2206_v39 = vmax.f32 %v2198_v29, %v2202_v33 }
0x19cb   : > { %v2207_v40 = vpack.c.bf16 %v2204_v37, %v2203_v36 }
0x19cc   : > { %v2208_v41 = vpack.c.bf16 %v2206_v39, %v2205_v38 }
0x19cd   : > { %3427 = vmatprep.mubr.msk.bf16.mxu1 %vm2094_vm10, %v2207_v40 }
0x19ce   : > { %3428 = vmatmul.mubr.msk.bf16.vlgmr.msra.gmra.mrb[28].mxu1 %vm2094_vm10, %v2208_v41 }
0x19cf   : > { %3462 = vmatprep.mubr.msk.f32.mxu1 %vm4069_vm2, %v4067_v0 }
0x1aa1   : > { %v4608_v42 = vpop.f32.mrb[28].mxu1 }
0x1aa2   : > { %v2281_v43 = vpop.f32.mrb[29].mxu1  ;;  %v2298_v45 = vmul.f32 %v4608_v42, %v4608_v42 }
0x1aa3   : > { %v3430_v44 = vpop.f32.mrb[30].mxu1  ;;  %v2296_v48 = vmul.f32 %v2281_v43, %v2281_v43 }
0x1aa4   : > { %v2299_v46 = vmul.f32 %v3430_v44, %v3430_v44  ;;  %v2284_v47 = vpop.f32.mrb[31].mxu1 }
0x1aa5   : > { %v2297_v49 = vmul.f32 %v2284_v47, %v2284_v47 }
0x1aa6   : > { %v3743_v50 = vpack.i.bf16 %v2299_v46, %v2298_v45 }
0x1aa7   : > { %v3738_v51 = vpack.i.bf16 %v2297_v49, %v2296_v48 }
0x1aa8   : > { %3744 = vrot.lane.b32.xlu1 %v3743_v50, %s4075_s29 }
0x1aa9   : > { %3739 = vrot.lane.b32.xlu0 %v3738_v51, %s4075_s29 }
0x1b1a   : > { %v3745_v30 = vpop.permute.xlu1 %3744 }
0x1b1b   : > { %v3747_v52 = vunpack.i.h.bf16 %v3745_v30  ;;  %v3746_v53 = vunpack.i.l.bf16 %v3745_v30  ;;  %v3740_v54 = vpop.permute.xlu0 %3739 }
0x1b1c   : > { %v3742_v55 = vunpack.i.h.bf16 %v3740_v54  ;;  %v3741_v56 = vunpack.i.l.bf16 %v3740_v54 }
0x1b1d   : > { %v2319_v57 = vsel %vm2094_vm10, %v3430_v44, %v3747_v52  ;;  %v2318_v58 = vsel %vm2094_vm10, %v4608_v42, %v3746_v53 }
0x1b1e   : > { %v3542_v59 = vpack.c.bf16 %v2319_v57, %v2318_v58  ;;  %v2317_v61 = vsel %vm2094_vm10, %v2284_v47, %v3742_v55  ;;  %v2316_v62 = vsel %vm2094_vm10, %v2281_v43, %v3741_v56 }
0x1b1f   : > { %v3539_v63 = vpack.c.bf16 %v2317_v61, %v2316_v62 }
0x1b21   : > { %3540 = vmatpush3.bf16.msra.mxu0 %v3539_v63 }
0x1b22   : > { %3541 = vmatprep.subr.bf16.mxu0 %v4072_v35 }
0x1b25   : > { %3543 = vmatpush3.bf16.msra.mxu0 %v3542_v59 }
0x1b26   : > { %3442 = vmatprep.subr.bf16.mxu0 %v3779_v5 }
0x1b28   : > { %3440 = vmatmul.mubr.msk.f32.vlgmr.msra.gmra.mrb[26].mxu0 %vm748_vm9, %v4074_v60 }
0x1b29   : > { %3443 = vmatpush3.bf16.msra.mxu0 %v3779_v5  ;;  %v3784_v5 = vld [vmem:[%s4780_s11 + $0x8] sm:$0xff]  }
0x1b2a   : > { %3444 = vmatprep.subr.bf16.mxu0 %v3780_v20 }
0x1b2d   : > { %3445 = vmatpush3.bf16.msra.mxu0 %v3780_v20  ;;  %v3785_v20 = vld [vmem:[%s4780_s11 + $0x10] sm:$0xff]  }
0x1b2e   : > { %3446 = vmatprep.subr.bf16.mxu0 %v3781_v11 }
0x1b31   : > { %3447 = vmatpush3.bf16.msra.mxu0 %v3781_v11 }
0x1b32   : > { %3448 = vmatprep.subr.bf16.mxu0 %v3782_v12 }
0x1b35   : > { %3449 = vmatpush3.bf16.msra.mxu0 %v3782_v12 }
0x1b36   : > { %3550 = vmatprep.subr.bf16.mxu0 %v4072_v35 }
0x1bfb   : > { %v2386_v1 = vpop.f32.mrb[26].mxu0 }
0x1bfc   : > { %v2390_v2 = vmul.f32 0.03125, %v2386_v1  ;;  %v3441_v3 = vpop.f32.mrb[27].mxu0  ;;  %v3783_v1 = vld [vmem:[%s4780_s11] sm:$0xff]  }
0x1bfe   : > { %v2391_v4 = vmul.f32 %v2390_v2, %v2390_v2  ;;  %v2401_v16 = vrot.slane %v2390_v2, %v4433_v9 }
0x1c00   : > { %2393 = vrot.lane.b32.xlu0 %v2391_v4, %s4075_s29  ;;  %v2402_v17 = vsub.f32 %v2281_v43, %v2401_v16  ;;  %v2403_v18 = vsub.f32 %v2284_v47, %v2401_v16  ;;  %v2404_v19 = vsub.f32 %v4608_v42, %v2401_v16  ;;  %v2405_v21 = vsub.f32 %v3430_v44, %v2401_v16 }
0x1c72   : > { %v2394_v6 = vpop.permute.xlu0 %2393 }
0x1c73   : > { %v2396_v7 = vsub.f32 %v2390_v2, %v2394_v6  ;;  %v3786_v6 = vld [vmem:[%s4780_s11 + $0x18] sm:$0xff]  }
0x1c75   : > { %v2397_v8 = vmax.f32 %v2396_v7, 0.0 }
0x1c77   : > { %v2406_v10 = vadd.f32 1e-05, %v2397_v8 }
0x1c79   : > { %3805 = vrsqrt.f32 %v2406_v10 }
0x1c83   : > { %v3806_v13 = vpop.eup %3805 }
0x1c84   : > { %v2411_v15 = vrot.slane %v3806_v13, %v4433_v9 }
0x1c86   : > { %2413 = vrot.lane.b32.xlu1 %v2411_v15, %s4075_s29 }
0x1cf8   : > { %v2414_v14 = vpop.permute.xlu1 %2413 }
0x1cf9   : > { %v2416_v22 = vmul.f32 %v2414_v14, %v2402_v17  ;;  %v2417_v23 = vmul.f32 %v2414_v14, %v2403_v18  ;;  %v2418_v24 = vmul.f32 %v2414_v14, %v2404_v19  ;;  %v2419_v25 = vmul.f32 %v2414_v14, %v2405_v21 }
0x1cfb   : > { %v2420_v26 = vmul.f32 0.01, %v2416_v22  ;;  %v2421_v27 = vmul.f32 0.01, %v2417_v23  ;;  %v2422_v28 = vmul.f32 0.01, %v2418_v24 }
0x1cfc   : > { %v2423_v29 = vmul.f32 0.01, %v2419_v25 }
0x1cfd   : > { %v2424_v31 = vmax.f32 %v2416_v22, %v2420_v26  ;;  %v2425_v32 = vmax.f32 %v2417_v23, %v2421_v27  ;;  %v2426_v34 = vmax.f32 %v2418_v24, %v2422_v28 }
0x1cfe   : > { %v2427_v33 = vmax.f32 %v2419_v25, %v2423_v29 }
0x1cff   : > { %v2428_v36 = vpack.c.bf16 %v2425_v32, %v2424_v31 }
0x1d00   : > { %v2429_v37 = vpack.c.bf16 %v2427_v33, %v2426_v34 }
0x1d01   : > { %3450 = vmatprep.mubr.msk.bf16.mxu0 %vm2094_vm10, %v2428_v36 }
0x1d02   : > { %3451 = vmatmul.mubr.msk.bf16.vlgmr.msra.gmra.mrb[28].mxu0 %vm2094_vm10, %v2429_v37 }
0x1d03   : > { %3481 = vmatprep.mubr.msk.f32.mxu0 %vm4069_vm2, %v4067_v0 }
0x1dd5   : > { %v4644_v38 = vpop.f32.mrb[28].mxu0 }
0x1dd6   : > { %v2502_v39 = vpop.f32.mrb[29].mxu0  ;;  %v2519_v41 = vmul.f32 %v4644_v38, %v4644_v38 }
0x1dd7   : > { %v3453_v40 = vpop.f32.mrb[30].mxu0  ;;  %v2517_v44 = vmul.f32 %v2502_v39, %v2502_v39 }
0x1dd8   : > { %v2520_v42 = vmul.f32 %v3453_v40, %v3453_v40  ;;  %v2505_v43 = vpop.f32.mrb[31].mxu0 }
0x1dd9   : > { %v2518_v45 = vmul.f32 %v2505_v43, %v2505_v43 }
0x1dda   : > { %v3753_v46 = vpack.i.bf16 %v2520_v42, %v2519_v41 }
0x1ddb   : > { %v3748_v47 = vpack.i.bf16 %v2518_v45, %v2517_v44 }
0x1ddc   : > { %3754 = vrot.lane.b32.xlu1 %v3753_v46, %s4075_s29 }
0x1ddd   : > { %3749 = vrot.lane.b32.xlu0 %v3748_v47, %s4075_s29 }
0x1e4e   : > { %v3755_v48 = vpop.permute.xlu1 %3754 }
0x1e4f   : > { %v3757_v49 = vunpack.i.h.bf16 %v3755_v48  ;;  %v3756_v50 = vunpack.i.l.bf16 %v3755_v48  ;;  %v3750_v51 = vpop.permute.xlu0 %3749 }
0x1e50   : > { %v3752_v30 = vunpack.i.h.bf16 %v3750_v51  ;;  %v3751_v52 = vunpack.i.l.bf16 %v3750_v51 }
0x1e51   : > { %v2540_v53 = vsel %vm2094_vm10, %v3453_v40, %v3757_v49  ;;  %v2539_v54 = vsel %vm2094_vm10, %v4644_v38, %v3756_v50 }
0x1e52   : > { %v3548_v55 = vpack.c.bf16 %v2540_v53, %v2539_v54  ;;  %v2538_v56 = vsel %vm2094_vm10, %v2505_v43, %v3752_v30  ;;  %v2537_v57 = vsel %vm2094_vm10, %v2502_v39, %v3751_v52  ;;  %v3787_v54 = vld [vmem:[%s4781_s12] sm:$0xff]  }
0x1e53   : > { %v3545_v58 = vpack.c.bf16 %v2538_v56, %v2537_v57 }
0x1e55   : > { %3546 = vmatpush3.bf16.msra.mxu1 %v3545_v58 }
0x1e56   : > { %3547 = vmatprep.subr.bf16.mxu1 %v4072_v35 }
0x1e59   : > { %3549 = vmatpush3.bf16.msra.mxu1 %v3548_v55  ;;  %v3788_v55 = vld [vmem:[%s4781_s12 + $0x8] sm:$0xff]  }
0x1e5a   : > { %3465 = vmatprep.subr.bf16.mxu1 %v4067_v0 }
0x1e5c   : > { %3463 = vmatmul.mubr.msk.f32.vlgmr.msra.gmra.mrb[32].mxu1 %vm748_vm9, %v4074_v60 }
0x1e5d   : > { %3473 = vmatprep.mubr.msk.bf16.mxu1 %vm4069_vm2, %v4067_v0  ;;  %3466 = vmatpush3.bf16.msra.mxu1 %v3783_v1 }
0x1e5e   : > { %3467 = vmatprep.subr.bf16.mxu1 %v4067_v0 }
0x1e61   : > { %3468 = vmatpush3.bf16.msra.mxu1 %v3784_v5 }
0x1e62   : > { %3469 = vmatprep.subr.bf16.mxu1 %v4067_v0 }
0x1e65   : > { %3470 = vmatpush3.bf16.msra.mxu1 %v3785_v20  ;;  %v3153_v20 = vld [vmem:[%s4824_s30] ss:$0 sm:$0xff] }
0x1e66   : > { %3471 = vmatprep.subr.bf16.mxu1 %v4067_v0 }
0x1e69   : > { %3472 = vmatpush3.bf16.msra.mxu1 %v3786_v6 }
0x1f2f   : > { %v2607_v59 = vpop.f32.mrb[32].mxu1 }
0x1f30   : > { %v2611_v61 = vmul.f32 0.03125, %v2607_v59  ;;  %v3464_v62 = vpop.f32.mrb[33].mxu1 }
0x1f32   : > { %v2612_v63 = vmul.f32 %v2611_v61, %v2611_v61  ;;  %v2622_v10 = vrot.slane %v2611_v61, %v4433_v9 }
0x1f34   : > { %2614 = vrot.lane.b32.xlu0 %v2612_v63, %s4075_s29  ;;  %v2623_v11 = vsub.f32 %v2502_v39, %v2622_v10  ;;  %v2624_v12 = vsub.f32 %v2505_v43, %v2622_v10  ;;  %v2625_v13 = vsub.f32 %v4644_v38, %v2622_v10  ;;  %v2626_v15 = vsub.f32 %v3453_v40, %v2622_v10 }
0x1fa6   : > { %v2615_v35 = vpop.permute.xlu0 %2614 }
0x1fa7   : > { %v2617_v2 = vsub.f32 %v2611_v61, %v2615_v35  ;;  %v3790_v61 = vld [vmem:[%s4781_s12 + $0x18] sm:$0xff]  }
0x1fa9   : > { %v2618_v3 = vmax.f32 %v2617_v2, 0.0 }
0x1fab   : > { %v2627_v4 = vadd.f32 1e-05, %v2618_v3 }
0x1fad   : > { %3807 = vrsqrt.f32 %v2627_v4 }
0x1fb7   : > { %v3808_v7 = vpop.eup %3807 }
0x1fb8   : > { %v2632_v8 = vrot.slane %v3808_v7, %v4433_v9 }
0x1fba   : > { %2634 = vrot.lane.b32.xlu1 %v2632_v8, %s4075_s29 }
0x202c   : > { %v2635_v16 = vpop.permute.xlu1 %2634 }
0x202d   : > { %v2637_v17 = vmul.f32 %v2635_v16, %v2623_v11  ;;  %v2638_v18 = vmul.f32 %v2635_v16, %v2624_v12  ;;  %v2639_v19 = vmul.f32 %v2635_v16, %v2625_v13  ;;  %v2640_v21 = vmul.f32 %v2635_v16, %v2626_v15 }
0x202f   : > { %v2641_v14 = vmul.f32 0.01, %v2637_v17  ;;  %v2642_v22 = vmul.f32 0.01, %v2638_v18  ;;  %v2643_v23 = vmul.f32 0.01, %v2639_v19 }
0x2030   : > { %v2644_v24 = vmul.f32 0.01, %v2640_v21 }
0x2031   : > { %v2645_v25 = vmax.f32 %v2637_v17, %v2641_v14  ;;  %v2646_v26 = vmax.f32 %v2638_v18, %v2642_v22  ;;  %v2647_v27 = vmax.f32 %v2639_v19, %v2643_v23 }
0x2032   : > { %v2648_v28 = vmax.f32 %v2640_v21, %v2644_v24 }
0x2033   : > { %v2649_v29 = vsel %vm2094_vm10, %v2645_v25, -inf  ;;  %v2650_v31 = vsel %vm2094_vm10, %v2647_v27, -inf  ;;  %v2652_v32 = vsel %vm2094_vm10, %v2646_v26, -inf }
0x2034   : > { %v2651_v34 = vmax.f32 %v2649_v29, %v2650_v31  ;;  %v2653_v33 = vsel %vm2094_vm10, %v2648_v28, -inf }
0x2035   : > { %v2654_v36 = vmax.f32 %v2652_v32, %v2653_v33 }
0x2037   : > { %v2655_v37 = vpack.c.bf16 %v2654_v36, %v2651_v34 }
0x2039   : > { %3474 = vmatmul.mubr.msk.bf16.vlgmr.msra.gmra.mrb[36].mxu1 %vm2094_vm10, %v2655_v37 }
0x210c   : > { %v2725_v38 = vpop.f32.mrb[36].mxu1 }
0x210d   : > { %v3475_v39 = vpop.f32.mrb[37].mxu1  ;;  %v2732_v41 = vmul.f32 %v2725_v38, %v2725_v38 }
0x210e   : > { %v2728_v40 = vpop.f32.mrb[38].mxu1 }
0x210f   : > { %v2733_v42 = vmul.f32 %v2728_v40, %v2728_v40  ;;  %v3476_v43 = vpop.f32.mrb[39].mxu1 }
0x2111   : > { %v3758_v44 = vpack.i.bf16 %v2733_v42, %v2732_v41 }
0x2113   : > { %3759 = vrot.lane.b32.xlu0 %v3758_v44, %s4075_s29 }
0x2185   : > { %v3760_v45 = vpop.permute.xlu0 %3759 }
0x2186   : > { %v3762_v46 = vunpack.i.h.bf16 %v3760_v45  ;;  %v3761_v47 = vunpack.i.l.bf16 %v3760_v45 }
0x2188   : > { %v2743_v48 = vsel %vm2094_vm10, %v2728_v40, %v3762_v46  ;;  %v2742_v49 = vsel %vm2094_vm10, %v2725_v38, %v3761_v47 }
0x2189   : > { %v3551_v50 = vpack.c.bf16 %v2743_v48, %v2742_v49 }
0x218b   : > { %3552 = vmatpush3.bf16.msra.mxu0 %v3551_v50 }
0x218c   : > { %3484 = vmatprep.subr.bf16.mxu0 %v4067_v0 }
0x218e   : > { %3482 = vmatmul.mubr.msk.f32.vlgmr.msra.gmra.mrb[32].mxu0 %vm660_vm6, %v4074_v60  ;;  %v3789_v60 = vld [vmem:[%s4781_s12 + $0x10] sm:$0xff]  }
0x218f   : > { %3492 = vmatprep.mubr.msk.bf16.mxu0 %vm4069_vm2, %v4067_v0  ;;  %3485 = vmatpush3.bf16.msra.mxu0 %v3787_v54 }
0x2190   : > { %3486 = vmatprep.subr.bf16.mxu0 %v4067_v0 }
0x2193   : > { %3487 = vmatpush3.bf16.msra.mxu0 %v3788_v55 }
0x2194   : > { %3488 = vmatprep.subr.bf16.mxu0 %v4067_v0 }
0x2197   : > { %3489 = vmatpush3.bf16.msra.mxu0 %v3789_v60 }
0x2198   : > { %3490 = vmatprep.subr.bf16.mxu0 %v4067_v0 }
0x219b   : > { %3491 = vmatpush3.bf16.msra.mxu0 %v3790_v61 }
0x2261   : > { %v2812_v51 = vpop.f32.mrb[32].mxu0 }
0x2262   : > { %v2816_v30 = vmul.f32 0.0625, %v2812_v51  ;;  %v3483_v52 = vpop.f32.mrb[33].mxu0 }
0x2264   : > { %v2817_v53 = vmul.f32 %v2816_v30, %v2816_v30  ;;  %v2827_v1 = vrot.slane %v2816_v30, %v4433_v9 }
0x2266   : > { %2819 = vrot.lane.b32.xlu1 %v2817_v53, %s4075_s29  ;;  %v2828_v0 = vsub.f32 %v2725_v38, %v2827_v1  ;;  %v2829_v35 = vsub.f32 %v2728_v40, %v2827_v1 }
0x22d8   : > { %v2820_v56 = vpop.permute.xlu1 %2819 }
0x22d9   : > { %v2822_v57 = vsub.f32 %v2816_v30, %v2820_v56 }
0x22db   : > { %v2823_v58 = vmax.f32 %v2822_v57, 0.0 }
0x22dd   : > { %v2830_v59 = vadd.f32 1e-05, %v2823_v58 }
0x22df   : > { %3809 = vrsqrt.f32 %v2830_v59 }
0x22e9   : > { %v3810_v62 = vpop.eup %3809 }
0x22ea   : > { %v2835_v63 = vrot.slane %v3810_v62, %v4433_v9 }
0x22ec   : > { %2837 = vrot.lane.b32.xlu0 %v2835_v63, %s4075_s29  ;;  %s3166_s29 = sshll.u32 %s4175_s17, 8  ;;  %s4728_s17 = scalar_lea.sflag [#allocation4], %s561_s21 }
0x22ed   : > { %s4724_s4 = scalar_lea.hbm %s4826_s22, %s3166_s29 }
0x235e   : > { %v2838_v2 = vpop.permute.xlu0 %2837 }
0x235f   : > { %v2840_v3 = vmul.f32 %v2838_v2, %v2828_v0  ;;  %v2841_v4 = vmul.f32 %v2838_v2, %v2829_v35 }
0x2361   : > { %v2842_v5 = vpack.c.bf16 %v2841_v4, %v2840_v3 }
0x2363   : > { %3493 = vmatmul.mubr.msk.bf16.vlgmr.msra.gmra.mrb[36].mxu0 %vm2094_vm10, %v2842_v5 }
0x2436   : > { %v2919_v6 = vpop.f32.mrb[36].mxu0 }
0x2437   : > { %v2920_v9 = vadd.f32 %v3153_v20, %v2919_v6  ;;  %v3494_v7 = vpop.f32.mrb[37].mxu0 }
0x2438   : > { %v2922_v8 = vpop.f32.mrb[38].mxu0 }
0x2439   : > { %2926 = vst.msk [vmem:[%s563_s16] sm:$0xff] %vm2094_vm10, %v2920_v9  ;;  %v2923_v10 = vadd.f32 %v3153_v20, %v2922_v8  ;;  %v3495_v11 = vpop.f32.mrb[39].mxu0 }
0x243b   : > { %2927 = vst.msk [vmem:[%s563_s16 + $0x8] sm:$0xff] %vm2094_vm10, %v2923_v10 }
0x243c   : > { %3992 = shalt.err (!%p3989_p2)
}
0x243d   : > { %s3993_s18 = scalar_lea.hbm %s4724_s4, 256  ;;  %s3997_s24 = scalar_lea.hbm %s4826_s22, 512 }
0x243e   : > { %p3994_p3 = scmp.ne.s32.totalorder %s4724_s4, %s3993_s18  ;;  %p3998_p7 = scmp.lt.u32.totalorder %s4724_s4, %s4826_s22 }
0x243f   : > { %p3999_p8 = scmp.lt.u32.totalorder %s3997_s24, %s3993_s18  ;;  %p4001_p13 = scmp.lt.u32.totalorder %s3993_s18, %s4724_s4 }
0x2440   : > { %p3995_p4 = pnand %p3994_p3, %p4827_p1 }
0x2441   : > { %p4000_p11 = por %p3999_p8, %p3998_p7 }
0x2442   : > { %p3996_p12 = pneg %p3995_p4 }
0x2443   : > { %p4002_p6 = por %p4001_p13, %p4000_p11 }
0x2445   : > { %p4003_p9 = pnand %p4002_p6, %p3996_p12 }
0x2447   : > { %4006 = shalt.err (!%p4003_p9)
}
0x2448   : > { %s4077_s16 = smov 128   ;;  %s4078_s29 = smov 8  }
0x2449   : > { %3577 = dma.vmem_to_hbm [thread:$0]  (%p4827_p1), %s4719_s28, 256, %s4724_s4, %s4728_s17, %s4077_s16, %s4077_s16, %s4078_s29  }
0x244a PF: > { %s4828_s15 = sld [smem:[#allocation22_spill]]  ;;  %s4829_s19 = sld [smem:[#allocation19_spill]] }
0x244b   : > { %s4830_s13 = sld [smem:[#allocation26_spill]] }
0x2450   : > { %p3614_p5 = scmp.ge.s32.totalorder %s4828_s15, 2  ;;  %s2957_s14 = sand.u32 1, %s4829_s19  }
0x2451   : > { %p4831_p0 = scmp.ne.s32.totalorder %s4830_s13, 0  ;;  %s2958_s23 = scalar_lea.sflag [#allocation4], %s2957_s14 }
0x2453   : > { %p3599_p10 = pnand %p3614_p5, %p4831_p0 }
0x2455   : > { %4040 = dma.done.wait (!%p3599_p10), %s2958_s23, 256  }
0x2456   : > { %4042 = vsyncadd (!%p3599_p10), %s2958_s23, 4294967040  ;;  %s4832_s16 = sld [smem:[#allocation23_spill]]  ;;  %s4833_s29 = sld [smem:[#allocation20_spill]] }
0x2457   : > { %s4834_s30 = sld [smem:[#allocation21_spill]]  ;;  %s4835_s15 = sld [smem:[#allocation24_spill]] }
0x245c   : > { %p28_p2 = scmp.ge.s32.totalorder %s4832_s16, 4  }
0x245e   :  { %30 = sbr.rel (!%p28_p2) target bundleno = 11 (0xb), region = 139 }
0x2465   :  { %2963 = vsyncpa [#allocation3], 1 }
0x2466   :  { %2965 = vsyncpa [#allocation3 + $0x1], 1 }
0x2467   :  { %2966 = vsyncpa [#allocation6], 1 }
0x2468   :  { %2967 = vsyncpa [#allocation9], 1 }
0x2469   :  { %2968 = vsyncpa [#allocation12], 1 }
0x246a   :  { %2969 = vsyncpa [#allocation4], 1 }
0x246b   :  { %2971 = vsyncpa [#allocation4 + $0x1], 1 }

</bundles_post_ra>
